<compile_context>
chip_gen: v7x
topology: tpu7x:2x2x1
jax: 0.10.0
libtpu: 0.0.40
codegen_flags: <defaults>
</compile_context>

<pallas_src>
import functools

import jax
import jax.numpy as jnp
from jax.experimental import pallas as pl
from jax.experimental.pallas import tpu as pltpu


_MIN_SPLIT_ROWS = 256   # split into >=2 tiles (v7x megacore) once B >= 2*this


def _leaky_relu(x, slope=0.2):
    return jnp.where(x > 0, x, slope * x)


def _round_up(x, m):
    return (x + m - 1) // m * m


def generator_kernel(x_ref,
                     w1_ref, b1_ref,
                     w2_ref, b2_ref,
                     w3_ref, b3_ref,
                     w4_ref, b4_ref,
                     o_ref):
    # Fully fused forward pass: intermediate activations never touch HBM.
    h = x_ref[...]                                                     # bf16 (bm, in)

    h = jnp.dot(h, w1_ref[...], preferred_element_type=jnp.float32) + b1_ref[...]
    h = _leaky_relu(h).astype(jnp.bfloat16)

    h = jnp.dot(h, w2_ref[...], preferred_element_type=jnp.float32) + b2_ref[...]
    h = _leaky_relu(h).astype(jnp.bfloat16)

    h = jnp.dot(h, w3_ref[...], preferred_element_type=jnp.float32) + b3_ref[...]
    h = _leaky_relu(h).astype(jnp.bfloat16)

    h = jnp.dot(h, w4_ref[...], preferred_element_type=jnp.float32) + b4_ref[...]
    o_ref[...] = jnp.tanh(h).astype(o_ref.dtype)


def generator_forward(x, params, *, block_m=512, out_dtype=jnp.bfloat16):
    """x: (B, input_size). params: w1..w4 (in,out) bf16, b1..b4 (1,out) f32."""
    B, in_size = x.shape
    d1 = params["w1"].shape[1]
    d2 = params["w2"].shape[1]
    d3 = params["w3"].shape[1]
    out_size = params["w4"].shape[1]

    # ---- balanced batch tiling -------------------------------------------
    # n_tiles: enough tiles to keep each <= block_m, and >=2 once the batch is
    # large enough to feed both v7x TensorCores.
    n_tiles = pl.cdiv(B, block_m)
    if B >= 2 * _MIN_SPLIT_ROWS:
        n_tiles = max(n_tiles, 2)
    # Balanced tile size, rounded to the bf16 sublane-pack (16 rows).
    bm = _round_up(pl.cdiv(B, n_tiles), 16)
    n_tiles = pl.cdiv(B, bm)
    padded_B = n_tiles * bm

    x_bf16 = x.astype(jnp.bfloat16)
    if padded_B != B:
        x_bf16 = jnp.pad(x_bf16, ((0, padded_B - B), (0, 0)))

    grid = (n_tiles,)

    def act_map(i):      # per-tile activations / output
        return (i, 0)

    def const_map(i):    # weights/biases: same block every step -> resident
        return (0, 0)

    def const_spec(shape):
        # Single-buffered: constant index_map blocks never change, so a second
        # pipeline buffer would be a dead copy of the weights.
        return pl.BlockSpec(shape, const_map, pipeline_mode=pl.Buffered(1))

    in_specs = [
        pl.BlockSpec((bm, in_size), act_map),
        const_spec((in_size, d1)),
        const_spec((1, d1)),
        const_spec((d1, d2)),
        const_spec((1, d2)),
        const_spec((d2, d3)),
        const_spec((1, d3)),
        const_spec((d3, out_size)),
        const_spec((1, out_size)),
    ]

    out = pl.pallas_call(
        generator_kernel,
        out_shape=jax.ShapeDtypeStruct((padded_B, out_size), out_dtype),
        grid=grid,
        in_specs=in_specs,
        out_specs=pl.BlockSpec((bm, out_size), act_map),
        compiler_params=pltpu.CompilerParams(
            dimension_semantics=("parallel",),   # megacore batch sharding (v7x)
            vmem_limit_bytes=32 << 20,           # sized for v7x's 64 MiB physical
        ),
    )(x_bf16,
      params["w1"], params["b1"],
      params["w2"], params["b2"],
      params["w3"], params["b3"],
      params["w4"], params["b4"])

    return out[:B]


def init_params(key, input_size, output_size):
    """Deterministic PyTorch-style (uniform +-1/sqrt(fan_in)) init.
    Weights stored bf16 [in, out] (MXU / HBM-byte friendly), biases f32."""
    dims = [input_size, 256, 512, 1024, output_size]
    params = {}
    for i in range(4):
        fan_in, fan_out = dims[i], dims[i + 1]
        key, kw, kb = jax.random.split(key, 3)
        bound = 1.0 / jnp.sqrt(fan_in)
        params[f"w{i+1}"] = jax.random.uniform(
            kw, (fan_in, fan_out), jnp.float32, -bound, bound).astype(jnp.bfloat16)
        params[f"b{i+1}"] = jax.random.uniform(
            kb, (1, fan_out), jnp.float32, -bound, bound)
    return params


def reference_forward(x, params):
    """Pure-JAX reference with identical precision choices (bf16 in, f32 acc)."""
    h = x.astype(jnp.bfloat16)
    for i in range(1, 4):
        h = jnp.dot(h, params[f"w{i}"],
                    preferred_element_type=jnp.float32) + params[f"b{i}"]
        h = jnp.where(h > 0, h, 0.2 * h).astype(jnp.bfloat16)
    h = jnp.dot(h, params["w4"],
                preferred_element_type=jnp.float32) + params["b4"]
    return jnp.tanh(h)


if __name__ == "__main__":
    key = jax.random.PRNGKey(0)
    k_in, k_in2, k_params = jax.random.split(key, 3)

    input_size = 64      # latent z dimension
    output_size = 128    # generated sample dimension
    params = init_params(k_params, input_size, output_size)

    # --- small-batch path (single tile, rounded to 16 rows) ----------------
    batch = 8
    x = jax.random.normal(k_in, (batch, input_size), jnp.float32)
    gen = jax.jit(functools.partial(generator_forward, block_m=512))
    out = jax.block_until_ready(gen(x, params))
    ref = reference_forward(x, params)
    assert out.shape == (batch, output_size)
    err = float(jnp.max(jnp.abs(out.astype(jnp.float32) - ref)))
    assert jnp.allclose(out.astype(jnp.float32), ref, atol=2e-2, rtol=2e-2), err

    # --- multi-tile path (balanced tiles + padding + grid > 1) -------------
    batch2 = 600
    x2 = jax.random.normal(k_in2, (batch2, input_size), jnp.float32)
    gen2 = jax.jit(functools.partial(generator_forward, block_m=256))
    out2 = jax.block_until_ready(gen2(x2, params))
    ref2 = reference_forward(x2, params)
    assert out2.shape == (batch2, output_size)
    err2 = float(jnp.max(jnp.abs(out2.astype(jnp.float32) - ref2)))
    assert jnp.allclose(out2.astype(jnp.float32), ref2, atol=2e-2, rtol=2e-2), err2

    print("KERNEL_OK")
</pallas_src>

<mosaic_0001>
module attributes {stable_mosaic.version = 11 : i64} {
  func.func @generator_kernel(%arg0: i32, %arg1: memref<16x64xbf16, #tpu.memory_space<vmem>>, %arg2: memref<64x256xbf16, #tpu.memory_space<vmem>>, %arg3: memref<1x256xf32, #tpu.memory_space<vmem>>, %arg4: memref<256x512xbf16, #tpu.memory_space<vmem>>, %arg5: memref<1x512xf32, #tpu.memory_space<vmem>>, %arg6: memref<512x1024xbf16, #tpu.memory_space<vmem>>, %arg7: memref<1x1024xf32, #tpu.memory_space<vmem>>, %arg8: memref<1024x128xbf16, #tpu.memory_space<vmem>>, %arg9: memref<1x128xf32, #tpu.memory_space<vmem>>, %arg10: memref<16x128xbf16, #tpu.memory_space<vmem>>) attributes {dimension_semantics = [#tpu.dimension_semantics<parallel>], iteration_bounds = array<i64: 1>, scalar_prefetch = 0 : i64, scratch_operands = 0 : i64, tpu.core_type = #tpu.core_type<tc>, window_params = [{transform_indices = @transform_0, window_bounds = array<i64: 16, 64>}, {pipeline_mode = #tpu.pipeline_mode<synchronous>, transform_indices = @transform_1, window_bounds = array<i64: 64, 256>}, {pipeline_mode = #tpu.pipeline_mode<synchronous>, transform_indices = @transform_2, window_bounds = array<i64: 1, 256>}, {pipeline_mode = #tpu.pipeline_mode<synchronous>, transform_indices = @transform_3, window_bounds = array<i64: 256, 512>}, {pipeline_mode = #tpu.pipeline_mode<synchronous>, transform_indices = @transform_4, window_bounds = array<i64: 1, 512>}, {pipeline_mode = #tpu.pipeline_mode<synchronous>, transform_indices = @transform_5, window_bounds = array<i64: 512, 1024>}, {pipeline_mode = #tpu.pipeline_mode<synchronous>, transform_indices = @transform_6, window_bounds = array<i64: 1, 1024>}, {pipeline_mode = #tpu.pipeline_mode<synchronous>, transform_indices = @transform_7, window_bounds = array<i64: 1024, 128>}, {pipeline_mode = #tpu.pipeline_mode<synchronous>, transform_indices = @transform_8, window_bounds = array<i64: 1, 128>}, {transform_indices = @transform_9, window_bounds = array<i64: 16, 128>}]} {
    %c0 = arith.constant 0 : index
    %c0_0 = arith.constant 0 : index
    %0 = vector.load %arg1[%c0, %c0_0] : memref<16x64xbf16, #tpu.memory_space<vmem>>, vector<16x64xbf16>
    %c0_1 = arith.constant 0 : index
    %c0_2 = arith.constant 0 : index
    %1 = vector.load %arg2[%c0_1, %c0_2] : memref<64x256xbf16, #tpu.memory_space<vmem>>, vector<64x256xbf16>
    %cst = arith.constant dense<0.000000e+00> : vector<16x256xf32>
    %2 = tpu.matmul %0, %1, %cst {dimension_numbers = #tpu.dot_dimension_numbers<[1], [0], [0], [1], [0, 0, 1, 1], [], []>} : vector<16x64xbf16>, vector<64x256xbf16>, vector<16x256xf32> -> vector<16x256xf32>
    %c0_3 = arith.constant 0 : index
    %c0_4 = arith.constant 0 : index
    %3 = vector.load %arg3[%c0_3, %c0_4] : memref<1x256xf32, #tpu.memory_space<vmem>>, vector<1x256xf32>
    %4 = vector.broadcast %3 : vector<1x256xf32> to vector<16x256xf32>
    %5 = arith.addf %2, %4 : vector<16x256xf32>
    %cst_5 = arith.constant 0.000000e+00 : f32
    %6 = vector.broadcast %cst_5 : f32 to vector<16x256xf32>
    %7 = arith.cmpf ogt, %5, %6 : vector<16x256xf32>
    %cst_6 = arith.constant 2.000000e-01 : f32
    %8 = vector.broadcast %cst_6 : f32 to vector<16x256xf32>
    %9 = arith.mulf %8, %5 : vector<16x256xf32>
    %10 = arith.select %7, %5, %9 : vector<16x256xi1>, vector<16x256xf32>
    %11 = arith.truncf %10 : vector<16x256xf32> to vector<16x256xbf16>
    %c0_7 = arith.constant 0 : index
    %c0_8 = arith.constant 0 : index
    %12 = vector.load %arg4[%c0_7, %c0_8] : memref<256x512xbf16, #tpu.memory_space<vmem>>, vector<256x512xbf16>
    %cst_9 = arith.constant dense<0.000000e+00> : vector<16x512xf32>
    %13 = tpu.matmul %11, %12, %cst_9 {dimension_numbers = #tpu.dot_dimension_numbers<[1], [0], [0], [1], [0, 0, 1, 1], [], []>} : vector<16x256xbf16>, vector<256x512xbf16>, vector<16x512xf32> -> vector<16x512xf32>
    %c0_10 = arith.constant 0 : index
    %c0_11 = arith.constant 0 : index
    %14 = vector.load %arg5[%c0_10, %c0_11] : memref<1x512xf32, #tpu.memory_space<vmem>>, vector<1x512xf32>
    %15 = vector.broadcast %14 : vector<1x512xf32> to vector<16x512xf32>
    %16 = arith.addf %13, %15 : vector<16x512xf32>
    %cst_12 = arith.constant 0.000000e+00 : f32
    %17 = vector.broadcast %cst_12 : f32 to vector<16x512xf32>
    %18 = arith.cmpf ogt, %16, %17 : vector<16x512xf32>
    %cst_13 = arith.constant 2.000000e-01 : f32
    %19 = vector.broadcast %cst_13 : f32 to vector<16x512xf32>
    %20 = arith.mulf %19, %16 : vector<16x512xf32>
    %21 = arith.select %18, %16, %20 : vector<16x512xi1>, vector<16x512xf32>
    %22 = arith.truncf %21 : vector<16x512xf32> to vector<16x512xbf16>
    %c0_14 = arith.constant 0 : index
    %c0_15 = arith.constant 0 : index
    %23 = vector.load %arg6[%c0_14, %c0_15] : memref<512x1024xbf16, #tpu.memory_space<vmem>>, vector<512x1024xbf16>
    %cst_16 = arith.constant dense<0.000000e+00> : vector<16x1024xf32>
    %24 = tpu.matmul %22, %23, %cst_16 {dimension_numbers = #tpu.dot_dimension_numbers<[1], [0], [0], [1], [0, 0, 1, 1], [], []>} : vector<16x512xbf16>, vector<512x1024xbf16>, vector<16x1024xf32> -> vector<16x1024xf32>
    %c0_17 = arith.constant 0 : index
    %c0_18 = arith.constant 0 : index
    %25 = vector.load %arg7[%c0_17, %c0_18] : memref<1x1024xf32, #tpu.memory_space<vmem>>, vector<1x1024xf32>
    %26 = vector.broadcast %25 : vector<1x1024xf32> to vector<16x1024xf32>
    %27 = arith.addf %24, %26 : vector<16x1024xf32>
    %cst_19 = arith.constant 0.000000e+00 : f32
    %28 = vector.broadcast %cst_19 : f32 to vector<16x1024xf32>
    %29 = arith.cmpf ogt, %27, %28 : vector<16x1024xf32>
    %cst_20 = arith.constant 2.000000e-01 : f32
    %30 = vector.broadcast %cst_20 : f32 to vector<16x1024xf32>
    %31 = arith.mulf %30, %27 : vector<16x1024xf32>
    %32 = arith.select %29, %27, %31 : vector<16x1024xi1>, vector<16x1024xf32>
    %33 = arith.truncf %32 : vector<16x1024xf32> to vector<16x1024xbf16>
    %c0_21 = arith.constant 0 : index
    %c0_22 = arith.constant 0 : index
    %34 = vector.load %arg8[%c0_21, %c0_22] : memref<1024x128xbf16, #tpu.memory_space<vmem>>, vector<1024x128xbf16>
    %cst_23 = arith.constant dense<0.000000e+00> : vector<16x128xf32>
    %35 = tpu.matmul %33, %34, %cst_23 {dimension_numbers = #tpu.dot_dimension_numbers<[1], [0], [0], [1], [0, 0, 1, 1], [], []>} : vector<16x1024xbf16>, vector<1024x128xbf16>, vector<16x128xf32> -> vector<16x128xf32>
    %c0_24 = arith.constant 0 : index
    %c0_25 = arith.constant 0 : index
    %36 = vector.load %arg9[%c0_24, %c0_25] : memref<1x128xf32, #tpu.memory_space<vmem>>, vector<1x128xf32>
    %37 = vector.broadcast %36 : vector<1x128xf32> to vector<16x128xf32>
    %38 = arith.addf %35, %37 : vector<16x128xf32>
    %39 = math.tanh %38 : vector<16x128xf32>
    %40 = arith.truncf %39 : vector<16x128xf32> to vector<16x128xbf16>
    %c0_26 = arith.constant 0 : index
    %c0_27 = arith.constant 0 : index
    %41 = vector.load %arg10[%c0_26, %c0_27] : memref<16x128xbf16, #tpu.memory_space<vmem>>, vector<16x128xbf16>
    tpu.vector_store %arg10[%c0_26, %c0_27], %40 {strides = array<i32>} : memref<16x128xbf16, #tpu.memory_space<vmem>>, vector<16x128xbf16>,
    return
  }
  func.func @transform_0(%arg0: i32) -> (i32, i32) {
    %c0_i32 = arith.constant 0 : i32
    %c0_i32_0 = arith.constant 0 : i32
    return %arg0, %c0_i32 : i32, i32
  }
  func.func @transform_1(%arg0: i32) -> (i32, i32) {
    %c0_i32 = arith.constant 0 : i32
    %c0_i32_0 = arith.constant 0 : i32
    %c0_i32_1 = arith.constant 0 : i32
    return %c0_i32, %c0_i32_0 : i32, i32
  }
  func.func @transform_2(%arg0: i32) -> (i32, i32) {
    %c0_i32 = arith.constant 0 : i32
    %c0_i32_0 = arith.constant 0 : i32
    %c0_i32_1 = arith.constant 0 : i32
    return %c0_i32, %c0_i32_0 : i32, i32
  }
  func.func @transform_3(%arg0: i32) -> (i32, i32) {
    %c0_i32 = arith.constant 0 : i32
    %c0_i32_0 = arith.constant 0 : i32
    %c0_i32_1 = arith.constant 0 : i32
    return %c0_i32, %c0_i32_0 : i32, i32
  }
  func.func @transform_4(%arg0: i32) -> (i32, i32) {
    %c0_i32 = arith.constant 0 : i32
    %c0_i32_0 = arith.constant 0 : i32
    %c0_i32_1 = arith.constant 0 : i32
    return %c0_i32, %c0_i32_0 : i32, i32
  }
  func.func @transform_5(%arg0: i32) -> (i32, i32) {
    %c0_i32 = arith.constant 0 : i32
    %c0_i32_0 = arith.constant 0 : i32
    %c0_i32_1 = arith.constant 0 : i32
    return %c0_i32, %c0_i32_0 : i32, i32
  }
  func.func @transform_6(%arg0: i32) -> (i32, i32) {
    %c0_i32 = arith.constant 0 : i32
    %c0_i32_0 = arith.constant 0 : i32
    %c0_i32_1 = arith.constant 0 : i32
    return %c0_i32, %c0_i32_0 : i32, i32
  }
  func.func @transform_7(%arg0: i32) -> (i32, i32) {
    %c0_i32 = arith.constant 0 : i32
    %c0_i32_0 = arith.constant 0 : i32
    %c0_i32_1 = arith.constant 0 : i32
    return %c0_i32, %c0_i32_0 : i32, i32
  }
  func.func @transform_8(%arg0: i32) -> (i32, i32) {
    %c0_i32 = arith.constant 0 : i32
    %c0_i32_0 = arith.constant 0 : i32
    %c0_i32_1 = arith.constant 0 : i32
    return %c0_i32, %c0_i32_0 : i32, i32
  }
  func.func @transform_9(%arg0: i32) -> (i32, i32) {
    %c0_i32 = arith.constant 0 : i32
    %c0_i32_0 = arith.constant 0 : i32
    return %arg0, %c0_i32 : i32, i32
  }
}

</mosaic_0001>

<bundles_post_ra>
// kernel: generator_forward.1
= control target key start
LH: loop header
LB: loop body
LE: loop exit
PB: predicated region body
PF: predicated region fallthrough
CT: control target
= control target key end

     0   :  { %14 = vsyncpa [#allocation3], 0  ;;  %s4444_s0 = inlined_call_operand.vmem [shape: bf16[16,64], index: 0, kind: input, shape index: {}]   ;;  %s4445_s1 = inlined_call_operand.hbm [shape: bf16[64,256], index: 1, kind: input, shape index: {}]   ;;  %s4446_s2 = inlined_call_operand.vmem [shape: f32[1,256], index: 2, kind: input, shape index: {}]   ;;  %s4447_s3 = inlined_call_operand.hbm [shape: bf16[256,512], index: 3, kind: input, shape index: {}]   ;;  %s4448_s4 = inlined_call_operand.vmem [shape: f32[1,512], index: 4, kind: input, shape index: {}]   ;;  %s4449_s5 = inlined_call_operand.hbm [shape: bf16[512,1024], index: 5, kind: input, shape index: {}]   ;;  %s4450_s6 = inlined_call_operand.vmem [shape: f32[1,1024], index: 6, kind: input, shape index: {}]   ;;  %s4451_s7 = inlined_call_operand.hbm [shape: bf16[1024,128], index: 7, kind: input, shape index: {}]   ;;  %s4452_s8 = inlined_call_operand.vmem [shape: f32[1,128], index: 8, kind: input, shape index: {}]   ;;  %s4453_s9 = inlined_call_operand.vmem [shape: bf16[16,128], index: 9, kind: output, shape index: {}]  }
   0x1   :  { %15 = vsyncpa [#allocation5], 0 }
   0x2   :  { %16 = vsyncpa [#allocation8], 0  ;;  %s4224_s30 = smov [#allocation4]   ;;  %s4130_s13 = scalar_lea.hbm %s4447_s3, 8192 }
   0x3   :  { %s38_s10 = sshll.u32 %s4224_s30, 4  ;;  %p4131_p0 = scmp.ne.s32.totalorder %s4447_s3, %s4130_s13  ;;  %s39_s10 = int_to_ptr.vmem [resolvable:$true] %s38_s10 }
   0x4   :  { %p4134_p1 = scmp.lt.u32.totalorder %s4130_s13, %s4447_s3 }
   0x6   :  { %p4136_p2 = pnand %p4134_p1, %p4131_p0 }
   0x8   :  { %4139 = shalt.err (!%p4136_p2)
}
   0x9   :  { %s4140_s18 = scalar_lea.vmem %s39_s10, 8192  ;;  %p4145_p4 = scmp.lt.s32.totalorder %s39_s10, %s39_s10 }
   0xa   :  { %p4141_p3 = scmp.ne.s32.totalorder %s39_s10, %s4140_s18  ;;  %p4146_p5 = scmp.lt.s32.totalorder %s4140_s18, %s4140_s18 }
   0xc   :  { %p4147_p6 = por %p4146_p5, %p4145_p4 }
   0xe   :  { %p4148_p7 = pnand %p4147_p6, %p4141_p3 }
  0x10   :  { %4151 = shalt.err (!%p4148_p7)
}
  0x11   :  { %s4225_s19 = smov 256   ;;  %s4226_s20 = smov 16  }
  0x12   :  { %44 = dma.hbm_to_vmem [thread:$0]  %s4447_s3, 8192, %s39_s10, [#allocation5], %s4225_s19, %s4225_s19, %s4226_s20  }
  0x13   :  { %s4227_s23 = smov [#allocation2]   ;;  %s4152_s27 = scalar_lea.hbm %s4445_s1, 1024 }
  0x14   :  { %s24_s24 = sshll.u32 %s4227_s23, 4  ;;  %p4153_p8 = scmp.ne.s32.totalorder %s4445_s1, %s4152_s27  ;;  %s25_s24 = int_to_ptr.vmem [resolvable:$true] %s24_s24 }
  0x15   :  { %p4156_p9 = scmp.lt.u32.totalorder %s4152_s27, %s4445_s1 }
  0x17   :  { %p4158_p10 = pnand %p4156_p9, %p4153_p8 }
  0x19   :  { %4161 = shalt.err (!%p4158_p10)
}
  0x1a   :  { %s4162_s12 = scalar_lea.vmem %s25_s24, 1024  ;;  %p4167_p12 = scmp.lt.s32.totalorder %s25_s24, %s25_s24 }
  0x1b   :  { %p4163_p11 = scmp.ne.s32.totalorder %s25_s24, %s4162_s12  ;;  %p4168_p13 = scmp.lt.s32.totalorder %s4162_s12, %s4162_s12 }
  0x1d   :  { %p4169_p0 = por %p4168_p13, %p4167_p12 }
  0x1f   :  { %p4170_p1 = pnand %p4169_p0, %p4163_p11 }
  0x21   :  { %4173 = shalt.err (!%p4170_p1)
}
  0x22   :  { %s4228_s3 = smov 128   ;;  %s4229_s10 = smov 8  }
  0x23   :  { %30 = dma.hbm_to_vmem [thread:$0]  %s4445_s1, 1024, %s25_s24, [#allocation3], %s4228_s3, %s4228_s3, %s4229_s10  }
  0x24   :  { %s4230_s15 = smov [#allocation6]   ;;  %s4174_s19 = scalar_lea.hbm %s4449_s5, 32768 }
  0x25   :  { %s52_s16 = sshll.u32 %s4230_s15, 4  ;;  %p4175_p2 = scmp.ne.s32.totalorder %s4449_s5, %s4174_s19  ;;  %s53_s16 = int_to_ptr.vmem [resolvable:$true] %s52_s16 }
  0x26   :  { %p4178_p3 = scmp.lt.u32.totalorder %s4174_s19, %s4449_s5 }
  0x28   :  { %p4180_p4 = pnand %p4178_p3, %p4175_p2 }
  0x2a   :  { %4183 = shalt.err (!%p4180_p4)
}
  0x2b   :  { %s4184_s25 = scalar_lea.vmem %s53_s16, 32768  ;;  %p4189_p6 = scmp.lt.s32.totalorder %s53_s16, %s53_s16 }
  0x2c   :  { %p4185_p5 = scmp.ne.s32.totalorder %s53_s16, %s4184_s25  ;;  %p4190_p7 = scmp.lt.s32.totalorder %s4184_s25, %s4184_s25 }
  0x2e   :  { %p4191_p8 = por %p4190_p7, %p4189_p6 }
  0x30   :  { %p4192_p9 = pnand %p4191_p8, %p4185_p5 }
  0x32   :  { %4195 = shalt.err (!%p4192_p9)
}
  0x33   :  { %s4231_s1 = smov 512   ;;  %s4232_s24 = smov 32  }
  0x34   :  { %58 = dma.hbm_to_vmem [thread:$0]  %s4449_s5, 32768, %s53_s16, [#allocation5], %s4231_s1, %s4231_s1, %s4232_s24  }
  0x35   :  { %s4233_s28 = smov [#allocation7]   ;;  %s4196_s12 = scalar_lea.hbm %s4451_s7, 8192 }
  0x36   :  { %s66_s29 = sshll.u32 %s4233_s28, 4  ;;  %p4197_p10 = scmp.ne.s32.totalorder %s4451_s7, %s4196_s12  ;;  %s67_s29 = int_to_ptr.vmem [resolvable:$true] %s66_s29 }
  0x37   :  { %p4200_p11 = scmp.lt.u32.totalorder %s4196_s12, %s4451_s7 }
  0x39   :  { %p4202_p12 = pnand %p4200_p11, %p4197_p10 }
  0x3b   :  { %4205 = shalt.err (!%p4202_p12)
}
  0x3c   :  { %s4206_s15 = scalar_lea.vmem %s67_s29, 8192  ;;  %p4211_p0 = scmp.lt.s32.totalorder %s67_s29, %s67_s29 }
  0x3d   :  { %p4207_p13 = scmp.ne.s32.totalorder %s67_s29, %s4206_s15  ;;  %p4212_p1 = scmp.lt.s32.totalorder %s4206_s15, %s4206_s15 }
  0x3f   :  { %p4213_p2 = por %p4212_p1, %p4211_p0 }
  0x41   :  { %p4214_p3 = pnand %p4213_p2, %p4207_p13 }
  0x43   :  { %4217 = shalt.err (!%p4214_p3)
}
  0x44   :  { %s4234_s5 = smov 64   ;;  %s4235_s16 = smov 4  }
  0x45   :  { %72 = dma.hbm_to_vmem [thread:$0]  %s4451_s7, 8192, %s67_s29, [#allocation8], %s4234_s5, %s4234_s5, %s4235_s16  }
  0x46   :  { %4218 = dma.done.wait [#allocation3], 1024  }
  0x47   :  { %4219 = vsyncadd [#allocation3], 4294966272 }
  0x48   :  { %4220 = dma.done.wait [#allocation5], 40960  }
  0x49   :  { %4221 = vsyncadd [#allocation5], 4294926336 }
  0x4a   :  { %4222 = dma.done.wait [#allocation8], 8192  }
  0x4b   :  { %4223 = vsyncadd [#allocation8], 4294959104  ;;  %v4236_v0 = vmov 0   ;;  %v3953_v1 = vld [vmem:[#allocation2 + $0x4] ss:$8 sps:$4 sm:$0xff]   ;;  %vm155_vm0 = vcmask 523264  }
  0x4c   :  { %191 = vmatprep.mubr.bf16.mxu0 %v4236_v0  ;;  %v3955_v2 = vld [vmem:[#allocation2] ss:$8 sps:$4 sm:$0xff]   ;;  %159 = vmatprep.subr.bf16.mxu0 %v3953_v1  ;;  %v3956_v3 = vld [vmem:[#allocation2 + $0x14] ss:$8 sps:$4 sm:$0xff]   ;;  %v3958_v4 = vld [vmem:[#allocation2 + $0x10] ss:$8 sps:$4 sm:$0xff]  }
  0x4d   :  { %160 = vmatpush1.bf16.msra.mxu0 %v3955_v2  ;;  %v3959_v5 = vld [vmem:[#allocation2 + $0x24] ss:$8 sps:$4 sm:$0xff]   ;;  %v3961_v6 = vld [vmem:[#allocation2 + $0x20] ss:$8 sps:$4 sm:$0xff]   ;;  %v3962_v8 = vld [vmem:[#allocation2 + $0x34] ss:$8 sps:$4 sm:$0xff]  }
  0x4e   :  { %161 = vmatprep.subr.bf16.mxu0 %v3956_v3  ;;  %v3966_v7 = vld [vmem:[#allocation4 + $0x4] ss:$16 sps:$4 sm:$0xff]   ;;  %v3971_v9 = vld [vmem:[#allocation4] ss:$16 sps:$4 sm:$0xff]   ;;  %v3970_v12 = vld [vmem:[#allocation4 + $0xc] ss:$16 sps:$4 sm:$0xff]  }
  0x4f   :  { %622 = vmatprep.subr.bf16.mxu1 %v3966_v7  ;;  %v3972_v10 = vld [vmem:[#allocation4 + $0x24] ss:$16 sps:$4 sm:$0xff]   ;;  %v3964_v11 = vld [vmem:[#allocation2 + $0x30] ss:$8 sps:$4 sm:$0xff]   ;;  %v3976_v19 = vld [vmem:[#allocation4 + $0x2c] ss:$16 sps:$4 sm:$0xff]  }
  0x50   :  { %623 = vmatpush1.bf16.msra.mxu1 %v3971_v9  ;;  %v3977_v13 = vld [vmem:[#allocation4 + $0x20] ss:$16 sps:$4 sm:$0xff]   ;;  %v3978_v14 = vld [vmem:[#allocation4 + $0x44] ss:$16 sps:$4 sm:$0xff]   ;;  %v3968_v16 = vld [vmem:[#allocation4 + $0x8] ss:$16 sps:$4 sm:$0xff]  }
  0x51   :  { %162 = vmatpush1.bf16.msra.mxu0 %v3958_v4  ;;  %624 = vmatprep.subr.bf16.mxu1 %v3972_v10  ;;  %v3965_v15 = vld [vmem:[%s4444_s0] sm:$0xff]   ;;  %v3974_v21 = vld [vmem:[#allocation4 + $0x28] ss:$16 sps:$4 sm:$0xff]   ;;  %v3982_v23 = vld [vmem:[#allocation4 + $0x4c] ss:$16 sps:$4 sm:$0xff]  }
  0x52   :  { %163 = vmatprep.subr.bf16.mxu0 %v3959_v5  ;;  %v3983_v17 = vld [vmem:[#allocation4 + $0x40] ss:$16 sps:$4 sm:$0xff]   ;;  %v3984_v18 = vld [vmem:[#allocation4 + $0x64] ss:$16 sps:$4 sm:$0xff]   ;;  %v3980_v24 = vld [vmem:[#allocation4 + $0x48] ss:$16 sps:$4 sm:$0xff]  }
  0x53   :  { %v3989_v20 = vld [vmem:[#allocation4 + $0x60] ss:$16 sps:$4 sm:$0xff]   ;;  %v3990_v22 = vld [vmem:[#allocation4 + $0x84] ss:$16 sps:$4 sm:$0xff]   ;;  %v3988_v27 = vld [vmem:[#allocation4 + $0x6c] ss:$16 sps:$4 sm:$0xff]  }
  0x54   :  { %625 = vmatpush1.bf16.msra.mxu1 %v3977_v13  ;;  %v3995_v25 = vld [vmem:[#allocation4 + $0x80] ss:$16 sps:$4 sm:$0xff]   ;;  %v3996_v26 = vld [vmem:[#allocation4 + $0xa4] ss:$16 sps:$4 sm:$0xff]   ;;  %v3986_v29 = vld [vmem:[#allocation4 + $0x68] ss:$16 sps:$4 sm:$0xff]  }
  0x55   :  { %164 = vmatpush1.bf16.msra.mxu0 %v3961_v6  ;;  %626 = vmatprep.subr.bf16.mxu1 %v3978_v14  ;;  %v4001_v28 = vld [vmem:[#allocation4 + $0xa0] ss:$16 sps:$4 sm:$0xff]   ;;  %v4002_v30 = vld [vmem:[#allocation4 + $0xc4] ss:$16 sps:$4 sm:$0xff]   ;;  %v3994_v31 = vld [vmem:[#allocation4 + $0x8c] ss:$16 sps:$4 sm:$0xff]  }
  0x56   :  { %165 = vmatprep.subr.bf16.mxu0 %v3962_v8  ;;  %v3992_v32 = vld [vmem:[#allocation4 + $0x88] ss:$16 sps:$4 sm:$0xff]   ;;  %v4007_v33 = vld [vmem:[#allocation4 + $0xc0] ss:$16 sps:$4 sm:$0xff]   ;;  %v4008_v34 = vld [vmem:[#allocation4 + $0xe4] ss:$16 sps:$4 sm:$0xff]  }
  0x57   :  { %v4000_v35 = vld [vmem:[#allocation4 + $0xac] ss:$16 sps:$4 sm:$0xff]   ;;  %v4013_v36 = vld [vmem:[#allocation4 + $0xe0] ss:$16 sps:$4 sm:$0xff]   ;;  %v3998_v37 = vld [vmem:[#allocation4 + $0xa8] ss:$16 sps:$4 sm:$0xff]  }
  0x58   :  { %627 = vmatpush1.bf16.msra.mxu1 %v3983_v17  ;;  %v4014_v38 = vld [vmem:[#allocation4 + $0x104] ss:$16 sps:$4 sm:$0xff]   ;;  %v4006_v39 = vld [vmem:[#allocation4 + $0xcc] ss:$16 sps:$4 sm:$0xff]   ;;  %v4004_v40 = vld [vmem:[#allocation4 + $0xc8] ss:$16 sps:$4 sm:$0xff]  }
  0x59   :  { %166 = vmatpush1.bf16.msra.mxu0 %v3964_v11  ;;  %628 = vmatprep.subr.bf16.mxu1 %v3984_v18  ;;  %v4019_v41 = vld [vmem:[#allocation4 + $0x100] ss:$16 sps:$4 sm:$0xff]   ;;  %v4020_v42 = vld [vmem:[#allocation4 + $0x124] ss:$16 sps:$4 sm:$0xff]   ;;  %v4012_v43 = vld [vmem:[#allocation4 + $0xec] ss:$16 sps:$4 sm:$0xff]   ;;  %v100_v18 = vlaneseq }
  0x5a   :  { %665 = vmatprep.subr.bf16.mxu0 %v3970_v12  ;;  %v4025_v44 = vld [vmem:[#allocation4 + $0x120] ss:$16 sps:$4 sm:$0xff]   ;;  %v4010_v45 = vld [vmem:[#allocation4 + $0xe8] ss:$16 sps:$4 sm:$0xff]   ;;  %v4026_v46 = vld [vmem:[#allocation4 + $0x144] ss:$16 sps:$4 sm:$0xff]  }
  0x5b   :  { %v4018_v47 = vld [vmem:[#allocation4 + $0x10c] ss:$16 sps:$4 sm:$0xff]   ;;  %v4031_v48 = vld [vmem:[#allocation4 + $0x140] ss:$16 sps:$4 sm:$0xff]   ;;  %v4016_v49 = vld [vmem:[#allocation4 + $0x108] ss:$16 sps:$4 sm:$0xff]  }
  0x5c   :  { %3425 = vmatmul.mubr.msk.bf16.vlgmr.msra.gmra.mrb[0].mxu0 %vm155_vm0, %v3965_v15  ;;  %629 = vmatpush1.bf16.msra.mxu1 %v3989_v20  ;;  %v4032_v50 = vld [vmem:[#allocation4 + $0x164] ss:$16 sps:$4 sm:$0xff]   ;;  %v4024_v51 = vld [vmem:[#allocation4 + $0x12c] ss:$16 sps:$4 sm:$0xff]   ;;  %v4037_v52 = vld [vmem:[#allocation4 + $0x160] ss:$16 sps:$4 sm:$0xff]  }
  0x5d   :  { %666 = vmatpush1.bf16.msra.mxu0 %v3968_v16  ;;  %630 = vmatprep.subr.bf16.mxu1 %v3990_v22  ;;  %v4022_v53 = vld [vmem:[#allocation4 + $0x128] ss:$16 sps:$4 sm:$0xff]   ;;  %v4038_v54 = vld [vmem:[#allocation4 + $0x184] ss:$16 sps:$4 sm:$0xff]   ;;  %v4030_v55 = vld [vmem:[#allocation4 + $0x14c] ss:$16 sps:$4 sm:$0xff]  }
  0x5e   :  { %667 = vmatprep.subr.bf16.mxu0 %v3976_v19  ;;  %v4043_v56 = vld [vmem:[#allocation4 + $0x180] ss:$16 sps:$4 sm:$0xff]   ;;  %v4028_v57 = vld [vmem:[#allocation4 + $0x148] ss:$16 sps:$4 sm:$0xff]   ;;  %v4036_v58 = vld [vmem:[#allocation4 + $0x16c] ss:$16 sps:$4 sm:$0xff]  }
  0x5f   :  { %v4034_v59 = vld [vmem:[#allocation4 + $0x168] ss:$16 sps:$4 sm:$0xff]   ;;  %v4042_v60 = vld [vmem:[#allocation4 + $0x18c] ss:$16 sps:$4 sm:$0xff]   ;;  %v4044_v62 = vld [vmem:[#allocation4 + $0x1a4] ss:$16 sps:$4 sm:$0xff]  }
  0x60   :  { %631 = vmatpush1.bf16.msra.mxu1 %v3995_v25  ;;  %v4040_v61 = vld [vmem:[#allocation4 + $0x188] ss:$16 sps:$4 sm:$0xff]   ;;  %v4048_v63 = vld [vmem:[#allocation4 + $0x1ac] ss:$16 sps:$4 sm:$0xff]   ;;  %v4049_v1 = vld [vmem:[#allocation4 + $0x1a0] ss:$16 sps:$4 sm:$0xff]  }
  0x61   :  { %668 = vmatpush1.bf16.msra.mxu0 %v3974_v21  ;;  %632 = vmatprep.subr.bf16.mxu1 %v3996_v26  ;;  %v4046_v0 = vld [vmem:[#allocation4 + $0x1a8] ss:$16 sps:$4 sm:$0xff]   ;;  %v4050_v2 = vld [vmem:[#allocation4 + $0x1c4] ss:$16 sps:$4 sm:$0xff]   ;;  %v4054_v3 = vld [vmem:[#allocation4 + $0x1cc] ss:$16 sps:$4 sm:$0xff]  }
  0x62   :  { %669 = vmatprep.subr.bf16.mxu0 %v3982_v23  ;;  %v4052_v4 = vld [vmem:[#allocation4 + $0x1c8] ss:$16 sps:$4 sm:$0xff]   ;;  %v4055_v5 = vld [vmem:[#allocation4 + $0x1c0] ss:$16 sps:$4 sm:$0xff]   ;;  %v4056_v6 = vld [vmem:[#allocation4 + $0x1e4] ss:$16 sps:$4 sm:$0xff]  }
  0x63   :  { %v4058_v7 = vld [vmem:[#allocation4 + $0x1e8] ss:$16 sps:$4 sm:$0xff]   ;;  %v4060_v8 = vld [vmem:[#allocation4 + $0x1ec] ss:$16 sps:$4 sm:$0xff]   ;;  %v4061_v9 = vld [vmem:[#allocation4 + $0x1e0] ss:$16 sps:$4 sm:$0xff]  }
  0x64   :  { %633 = vmatpush1.bf16.msra.mxu1 %v4001_v28  ;;  %v736_v10 = vld [vmem:[#allocation6] sm:$0xff]  ;;  %v737_v12 = vld [vmem:[#allocation6 + $0x8] sm:$0xff]  ;;  %v4338_v19 = vshrl.u32 %v100_v18, 7 }
  0x65   :  { %670 = vmatpush1.bf16.msra.mxu0 %v3980_v24  ;;  %634 = vmatprep.subr.bf16.mxu1 %v4002_v30  ;;  %v740_v11 = vld [vmem:[#allocation6 + $0x20] sm:$0xff]  ;;  %v741_v15 = vld [vmem:[#allocation6 + $0x28] sm:$0xff] }
  0x66   :  { %671 = vmatprep.subr.bf16.mxu0 %v3988_v27  ;;  %v3490_v13 = vcombine.low %v736_v10, %v740_v11  ;;  %v3491_v14 = vcombine.high %v736_v10, %v740_v11  ;;  %v3492_v16 = vcombine.low %v737_v12, %v741_v15  ;;  %v3493_v17 = vcombine.high %v737_v12, %v741_v15  ;;  %v98_v21 = vld [vmem:[%s4446_s2] sm:$0x3]  ;;  %v777_v11 = vld [vmem:[#allocation6 + $0x148] sm:$0xff] }
  0x67   :  { %v4341_v20 = vsub.s32 0, %v4338_v19  ;;  %v4347_v22 = vsub.s32 1, %v4338_v19  ;;  %v780_v10 = vld [vmem:[#allocation6 + $0x160] sm:$0xff]  ;;  %v781_v12 = vld [vmem:[#allocation6 + $0x168] sm:$0xff] }
  0x68   :  { %635 = vmatpush1.bf16.msra.mxu1 %v4007_v33  ;;  %v788_v18 = vld [vmem:[#allocation6 + $0x1a0] sm:$0xff] }
  0x69   :  { %672 = vmatpush1.bf16.msra.mxu0 %v3986_v29  ;;  %636 = vmatprep.subr.bf16.mxu1 %v4008_v34  ;;  %v103_v23 = vrot.slane %v98_v21, %v4341_v20  ;;  %v107_v24 = vrot.slane %v98_v21, %v4347_v22  ;;  %v785_v21 = vld [vmem:[#allocation6 + $0x188] sm:$0xff] }
  0x6a   :  { %673 = vmatprep.subr.bf16.mxu0 %v3994_v31 }
  0x6c   :  { %637 = vmatpush1.bf16.msra.mxu1 %v4013_v36 }
  0x6d   :  { %674 = vmatpush1.bf16.msra.mxu0 %v3992_v32  ;;  %638 = vmatprep.subr.bf16.mxu1 %v4014_v38 }
  0x6e   :  { %675 = vmatprep.subr.bf16.mxu0 %v4000_v35 }
  0x70   :  { %639 = vmatpush1.bf16.msra.mxu1 %v4019_v41  ;;  %v745_v41 = vld [vmem:[#allocation6 + $0x48] sm:$0xff] }
  0x71   :  { %676 = vmatpush1.bf16.msra.mxu0 %v3998_v37  ;;  %640 = vmatprep.subr.bf16.mxu1 %v4020_v42  ;;  %v744_v37 = vld [vmem:[#allocation6 + $0x40] sm:$0xff]  ;;  %v749_v42 = vld [vmem:[#allocation6 + $0x68] sm:$0xff] }
  0x72   :  { %677 = vmatprep.subr.bf16.mxu0 %v4006_v39 }
  0x74   :  { %641 = vmatpush1.bf16.msra.mxu1 %v4025_v44 }
  0x75   :  { %678 = vmatpush1.bf16.msra.mxu0 %v4004_v40  ;;  %642 = vmatprep.subr.bf16.mxu1 %v4026_v46  ;;  %v748_v40 = vld [vmem:[#allocation6 + $0x60] sm:$0xff] }
  0x76   :  { %679 = vmatprep.subr.bf16.mxu0 %v4012_v43 }
  0x78   :  { %643 = vmatpush1.bf16.msra.mxu1 %v4031_v48  ;;  %v3501_v48 = vcombine.high %v745_v41, %v749_v42 }
  0x79   :  { %680 = vmatpush1.bf16.msra.mxu0 %v4010_v45  ;;  %644 = vmatprep.subr.bf16.mxu1 %v4032_v50  ;;  %v756_v50 = vld [vmem:[#allocation6 + $0xa0] sm:$0xff] }
  0x7a   :  { %681 = vmatprep.subr.bf16.mxu0 %v4018_v47  ;;  %v3499_v47 = vcombine.high %v744_v37, %v748_v40 }
  0x7c   :  { %645 = vmatpush1.bf16.msra.mxu1 %v4037_v52  ;;  %v757_v52 = vld [vmem:[#allocation6 + $0xa8] sm:$0xff] }
  0x7d   :  { %682 = vmatpush1.bf16.msra.mxu0 %v4016_v49  ;;  %646 = vmatprep.subr.bf16.mxu1 %v4038_v54  ;;  %v752_v49 = vld [vmem:[#allocation6 + $0x80] sm:$0xff]  ;;  %v3500_v54 = vcombine.low %v745_v41, %v749_v42 }
  0x7e   :  { %683 = vmatprep.subr.bf16.mxu0 %v4024_v51  ;;  %v753_v51 = vld [vmem:[#allocation6 + $0x88] sm:$0xff] }
  0x80   :  { %647 = vmatpush1.bf16.msra.mxu1 %v4043_v56  ;;  %v3509_v56 = vcombine.high %v753_v51, %v757_v52 }
  0x81   :  { %684 = vmatpush1.bf16.msra.mxu0 %v4022_v53  ;;  %648 = vmatprep.subr.bf16.mxu1 %v4044_v62  ;;  %v3498_v53 = vcombine.low %v744_v37, %v748_v40  ;;  %v3508_v62 = vcombine.low %v753_v51, %v757_v52  ;;  %v804_v37 = vld [vmem:[#allocation6 + $0x220] sm:$0xff] }
  0x82   :  { %685 = vmatprep.subr.bf16.mxu0 %v4030_v55  ;;  %v3507_v55 = vcombine.high %v752_v49, %v756_v50  ;;  %v816_v52 = vld [vmem:[#allocation6 + $0x280] sm:$0xff] }
  0x84   :  { %649 = vmatpush1.bf16.msra.mxu1 %v4049_v1  ;;  %v768_v1 = vld [vmem:[#allocation6 + $0x100] sm:$0xff] }
  0x85   :  { %686 = vmatpush1.bf16.msra.mxu0 %v4028_v57  ;;  %650 = vmatprep.subr.bf16.mxu1 %v4050_v2  ;;  %v760_v57 = vld [vmem:[#allocation6 + $0xc0] sm:$0xff] }
  0x86   :  { %687 = vmatprep.subr.bf16.mxu0 %v4036_v58  ;;  %v764_v58 = vld [vmem:[#allocation6 + $0xe0] sm:$0xff] }
  0x87   :  { %v772_v2 = vld [vmem:[#allocation6 + $0x120] sm:$0xff] }
  0x88   :  { %651 = vmatpush1.bf16.msra.mxu1 %v4055_v5  ;;  %v3514_v5 = vcombine.low %v760_v57, %v764_v58 }
  0x89   :  { %688 = vmatpush1.bf16.msra.mxu0 %v4034_v59  ;;  %652 = vmatprep.subr.bf16.mxu1 %v4056_v6  ;;  %v761_v59 = vld [vmem:[#allocation6 + $0xc8] sm:$0xff] }
  0x8a   :  { %689 = vmatprep.subr.bf16.mxu0 %v4042_v60  ;;  %v765_v60 = vld [vmem:[#allocation6 + $0xe8] sm:$0xff] }
  0x8b   :  { %v3516_v6 = vcombine.low %v761_v59, %v765_v60 }
  0x8c   :  { %653 = vmatpush1.bf16.msra.mxu1 %v4061_v9  ;;  %v776_v9 = vld [vmem:[#allocation6 + $0x140] sm:$0xff] }
  0x8d   :  { %690 = vmatpush1.bf16.msra.mxu0 %v4040_v61  ;;  %2314 = vmatprep.subr.bf16.mxu1 %v3491_v14  ;;  %v3506_v61 = vcombine.low %v752_v49, %v756_v50  ;;  %v3531_v15 = vcombine.high %v776_v9, %v780_v10 }
  0x8e   :  { %691 = vmatprep.subr.bf16.mxu0 %v4048_v63  ;;  %v3515_v63 = vcombine.high %v760_v57, %v764_v58 }
  0x91   :  { %692 = vmatpush1.bf16.msra.mxu0 %v4046_v0  ;;  %v3517_v0 = vcombine.high %v761_v59, %v765_v60  ;;  %v824_v60 = vld [vmem:[#allocation6 + $0x2c0] sm:$0xff] }
  0x92   :  { %693 = vmatprep.subr.bf16.mxu0 %v4054_v3  ;;  %v769_v3 = vld [vmem:[#allocation6 + $0x108] sm:$0xff] }
  0x95   :  { %694 = vmatpush1.bf16.msra.mxu0 %v4052_v4  ;;  %v773_v4 = vld [vmem:[#allocation6 + $0x128] sm:$0xff] }
  0x96   :  { %695 = vmatprep.subr.bf16.mxu0 %v4060_v8  ;;  %v3525_v8 = vcombine.high %v769_v3, %v773_v4  ;;  %v3524_v14 = vcombine.low %v769_v3, %v773_v4  ;;  %v832_v4 = vld [vmem:[#allocation6 + $0x300] sm:$0xff] }
  0x99   :  { %696 = vmatpush1.bf16.msra.mxu0 %v4058_v7  ;;  %v3523_v7 = vcombine.high %v768_v1, %v772_v2 }
  0x9a   :  { %2400 = vmatprep.subr.bf16.mxu0 %v3493_v17  ;;  %v784_v17 = vld [vmem:[#allocation6 + $0x180] sm:$0xff] }
 0x12f   :  { %v193_v25 = vpop.f32.mrb[0].mxu0 }
 0x130   :  { %v194_v26 = vadd.f32 %v193_v25, %v103_v23  ;;  %v195_v27 = vpop.f32.mrb[1].mxu0  ;;  %v3532_v25 = vcombine.low %v777_v11, %v781_v12 }
 0x131   :  { %v196_v28 = vadd.f32 %v195_v27, %v107_v24  ;;  %v197_v29 = vpop.f32.mrb[2].mxu0 }
 0x132   :  { %v206_v30 = vmul.f32 0.2, %v194_v26  ;;  %v198_v31 = vadd.f32 %v197_v29, %v103_v23  ;;  %v199_v32 = vpop.f32.mrb[3].mxu0  ;;  %vm202_vm1 = vcmp.gt.f32.partialorder %v194_v26, 0.0  ;;  %v789_v23 = vld [vmem:[#allocation6 + $0x1a8] sm:$0xff]  ;;  %v796_v29 = vld [vmem:[#allocation6 + $0x1e0] sm:$0xff] }
 0x133   :  { %v207_v33 = vmul.f32 0.2, %v196_v28  ;;  %v200_v34 = vadd.f32 %v199_v32, %v107_v24  ;;  %vm203_vm3 = vcmp.gt.f32.partialorder %v196_v28, 0.0  ;;  %v3530_v24 = vcombine.low %v776_v9, %v780_v10 }
 0x134   :  { %vm204_vm2 = vcmp.gt.f32.partialorder %v198_v31, 0.0  ;;  %v208_v35 = vmul.f32 0.2, %v198_v31  ;;  %v210_v38 = vsel %vm202_vm1, %v194_v26, %v206_v30  ;;  %v3539_v26 = vcombine.high %v784_v17, %v788_v18  ;;  %v793_v30 = vld [vmem:[#allocation6 + $0x1c8] sm:$0xff] }
 0x135   :  { %v209_v36 = vmul.f32 0.2, %v200_v34  ;;  %vm205_vm4 = vcmp.gt.f32.partialorder %v200_v34, 0.0  ;;  %v211_v43 = vsel %vm203_vm3, %v196_v28, %v207_v33  ;;  %v3541_v27 = vcombine.high %v785_v21, %v789_v23  ;;  %v792_v28 = vld [vmem:[#allocation6 + $0x1c0] sm:$0xff] }
 0x136   :  { %v212_v39 = vsel %vm204_vm2, %v198_v31, %v208_v35  ;;  %v797_v31 = vld [vmem:[#allocation6 + $0x1e8] sm:$0xff]  ;;  %v3538_v32 = vcombine.low %v784_v17, %v788_v18  ;;  %v3540_v33 = vcombine.low %v785_v21, %v789_v23  ;;  %v3546_v40 = vcombine.low %v792_v28, %v796_v29 }
 0x137   :  { %v213_v44 = vsel %vm205_vm4, %v200_v34, %v209_v36  ;;  %v214_v45 = vpack.c.bf16 %v212_v39, %v210_v38  ;;  %v3547_v34 = vcombine.high %v792_v28, %v796_v29  ;;  %v3549_v35 = vcombine.high %v793_v30, %v797_v31  ;;  %v800_v36 = vld [vmem:[#allocation6 + $0x200] sm:$0xff]  ;;  %v801_v38 = vld [vmem:[#allocation6 + $0x208] sm:$0xff] }
 0x138   :  { %v215_v46 = vpack.c.bf16 %v213_v44, %v211_v43  ;;  %v805_v39 = vld [vmem:[#allocation6 + $0x228] sm:$0xff]  ;;  %v3548_v41 = vcombine.low %v793_v30, %v797_v31  ;;  %v3555_v42 = vcombine.high %v800_v36, %v804_v37  ;;  %v808_v44 = vld [vmem:[#allocation6 + $0x240] sm:$0xff] }
 0x139   :  { %v3557_v43 = vcombine.high %v801_v38, %v805_v39  ;;  %v3556_v49 = vcombine.low %v801_v38, %v805_v39  ;;  %v853_v29 = vld [vmem:[#allocation6 + $0x3a8] sm:$0xff] }
 0x13a   :  { %654 = vmatprep.mubr.bf16.mxu1 %v215_v46  ;;  %697 = vmatprep.mubr.bf16.mxu0 %v215_v46  ;;  %v809_v46 = vld [vmem:[#allocation6 + $0x248] sm:$0xff] }
 0x13b   :  { %655 = vmatmul.mubr.bf16.vlgmr.msra.gmra.mrb[0].mxu1 %v214_v45  ;;  %698 = vmatmul.mubr.bf16.vlgmr.msra.gmra.mrb[4].mxu0 %v214_v45  ;;  %v812_v45 = vld [vmem:[#allocation6 + $0x260] sm:$0xff] }
 0x13c   :  { %2315 = vmatpush1.bf16.msra.mxu1 %v3490_v13  ;;  %2401 = vmatpush1.bf16.msra.mxu0 %v3492_v16  ;;  %v3522_v13 = vcombine.low %v768_v1, %v772_v2  ;;  %v3533_v16 = vcombine.high %v777_v11, %v781_v12  ;;  %v3563_v50 = vcombine.high %v808_v44, %v812_v45  ;;  %v840_v12 = vld [vmem:[#allocation6 + $0x340] sm:$0xff] }
 0x13d   :  { %2316 = vmatprep.subr.bf16.mxu1 %v3499_v47  ;;  %2402 = vmatprep.subr.bf16.mxu0 %v3501_v48  ;;  %v813_v47 = vld [vmem:[#allocation6 + $0x268] sm:$0xff]  ;;  %v3554_v48 = vcombine.low %v800_v36, %v804_v37 }
 0x13e   :  { %v3565_v51 = vcombine.high %v809_v46, %v813_v47  ;;  %v3564_v57 = vcombine.low %v809_v46, %v813_v47  ;;  %v861_v37 = vld [vmem:[#allocation6 + $0x3e8] sm:$0xff] }
 0x140   :  { %2317 = vmatpush1.bf16.msra.mxu1 %v3498_v53  ;;  %2403 = vmatpush1.bf16.msra.mxu0 %v3500_v54  ;;  %v820_v53 = vld [vmem:[#allocation6 + $0x2a0] sm:$0xff]  ;;  %v817_v54 = vld [vmem:[#allocation6 + $0x288] sm:$0xff] }
 0x141   :  { %2318 = vmatprep.subr.bf16.mxu1 %v3507_v55  ;;  %2404 = vmatprep.subr.bf16.mxu0 %v3509_v56  ;;  %v821_v55 = vld [vmem:[#allocation6 + $0x2a8] sm:$0xff]  ;;  %v3562_v56 = vcombine.low %v808_v44, %v812_v45  ;;  %v3571_v58 = vcombine.high %v816_v52, %v820_v53 }
 0x142   :  { %v3573_v59 = vcombine.high %v817_v54, %v821_v55  ;;  %v3572_v1 = vcombine.low %v817_v54, %v821_v55  ;;  %v4359_v45 = vld [vmem:[#allocation6 + $0x428] sm:$0xff] }
 0x144   :  { %2319 = vmatpush1.bf16.msra.mxu1 %v3506_v61  ;;  %2405 = vmatpush1.bf16.msra.mxu0 %v3508_v62  ;;  %v828_v61 = vld [vmem:[#allocation6 + $0x2e0] sm:$0xff]  ;;  %v825_v62 = vld [vmem:[#allocation6 + $0x2c8] sm:$0xff] }
 0x145   :  { %2320 = vmatprep.subr.bf16.mxu1 %v3515_v63  ;;  %2406 = vmatprep.subr.bf16.mxu0 %v3517_v0  ;;  %v829_v63 = vld [vmem:[#allocation6 + $0x2e8] sm:$0xff]  ;;  %v3570_v0 = vcombine.low %v816_v52, %v820_v53  ;;  %v3579_v2 = vcombine.high %v824_v60, %v828_v61 }
 0x146   :  { %v3581_v3 = vcombine.high %v825_v62, %v829_v63  ;;  %v3580_v9 = vcombine.low %v825_v62, %v829_v63 }
 0x148   :  { %2321 = vmatpush1.bf16.msra.mxu1 %v3514_v5  ;;  %2407 = vmatpush1.bf16.msra.mxu0 %v3516_v6  ;;  %v836_v5 = vld [vmem:[#allocation6 + $0x320] sm:$0xff]  ;;  %v833_v6 = vld [vmem:[#allocation6 + $0x308] sm:$0xff] }
 0x149   :  { %2322 = vmatprep.subr.bf16.mxu1 %v3523_v7  ;;  %2408 = vmatprep.subr.bf16.mxu0 %v3525_v8  ;;  %v837_v7 = vld [vmem:[#allocation6 + $0x328] sm:$0xff]  ;;  %v3578_v8 = vcombine.low %v824_v60, %v828_v61  ;;  %v3587_v10 = vcombine.high %v832_v4, %v836_v5 }
 0x14a   :  { %v3589_v11 = vcombine.high %v833_v6, %v837_v7  ;;  %v3588_v17 = vcombine.low %v833_v6, %v837_v7 }
 0x14c   :  { %2323 = vmatpush1.bf16.msra.mxu1 %v3522_v13  ;;  %2409 = vmatpush1.bf16.msra.mxu0 %v3524_v14  ;;  %v844_v13 = vld [vmem:[#allocation6 + $0x360] sm:$0xff]  ;;  %v841_v14 = vld [vmem:[#allocation6 + $0x348] sm:$0xff] }
 0x14d   :  { %2324 = vmatprep.subr.bf16.mxu1 %v3531_v15  ;;  %2410 = vmatprep.subr.bf16.mxu0 %v3533_v16  ;;  %v845_v15 = vld [vmem:[#allocation6 + $0x368] sm:$0xff]  ;;  %v3586_v16 = vcombine.low %v832_v4, %v836_v5  ;;  %v3595_v18 = vcombine.high %v840_v12, %v844_v13  ;;  %v3594_v23 = vcombine.low %v840_v12, %v844_v13 }
 0x14e   :  { %v3597_v21 = vcombine.high %v841_v14, %v845_v15 }
 0x150   :  { %2325 = vmatpush1.bf16.msra.mxu1 %v3530_v24  ;;  %2411 = vmatpush1.bf16.msra.mxu0 %v3532_v25  ;;  %v3596_v24 = vcombine.low %v841_v14, %v845_v15  ;;  %v848_v25 = vld [vmem:[#allocation6 + $0x380] sm:$0xff] }
 0x151   :  { %2326 = vmatprep.subr.bf16.mxu1 %v3539_v26  ;;  %2412 = vmatprep.subr.bf16.mxu0 %v3541_v27  ;;  %v852_v26 = vld [vmem:[#allocation6 + $0x3a0] sm:$0xff]  ;;  %v849_v27 = vld [vmem:[#allocation6 + $0x388] sm:$0xff] }
 0x152   :  { %v3603_v28 = vcombine.high %v848_v25, %v852_v26  ;;  %v3602_v30 = vcombine.low %v848_v25, %v852_v26  ;;  %v3604_v31 = vcombine.low %v849_v27, %v853_v29  ;;  %v872_v25 = vld [vmem:[#allocation6 + $0x440] sm:$0xff] }
 0x154   :  { %2327 = vmatpush1.bf16.msra.mxu1 %v3538_v32  ;;  %2413 = vmatpush1.bf16.msra.mxu0 %v3540_v33  ;;  %v3605_v32 = vcombine.high %v849_v27, %v853_v29  ;;  %v856_v33 = vld [vmem:[#allocation6 + $0x3c0] sm:$0xff] }
 0x155   :  { %2328 = vmatprep.subr.bf16.mxu1 %v3547_v34  ;;  %2414 = vmatprep.subr.bf16.mxu0 %v3549_v35  ;;  %v860_v34 = vld [vmem:[#allocation6 + $0x3e0] sm:$0xff]  ;;  %v857_v35 = vld [vmem:[#allocation6 + $0x3c8] sm:$0xff] }
 0x156   :  { %v3611_v36 = vcombine.high %v856_v33, %v860_v34  ;;  %v3610_v38 = vcombine.low %v856_v33, %v860_v34  ;;  %v3612_v39 = vcombine.low %v857_v35, %v861_v37 }
 0x158   :  { %2329 = vmatpush1.bf16.msra.mxu1 %v3546_v40  ;;  %2415 = vmatpush1.bf16.msra.mxu0 %v3548_v41  ;;  %v3613_v40 = vcombine.high %v857_v35, %v861_v37  ;;  %v4351_v41 = vld [vmem:[#allocation6 + $0x400] sm:$0xff] }
 0x159   :  { %2330 = vmatprep.subr.bf16.mxu1 %v3555_v42  ;;  %2416 = vmatprep.subr.bf16.mxu0 %v3557_v43  ;;  %v4353_v42 = vld [vmem:[#allocation6 + $0x420] sm:$0xff]  ;;  %v4355_v43 = vld [vmem:[#allocation6 + $0x408] sm:$0xff] }
 0x15a   :  { %v3619_v44 = vcombine.high %v4351_v41, %v4353_v42  ;;  %v3618_v46 = vcombine.low %v4351_v41, %v4353_v42  ;;  %v3620_v47 = vcombine.low %v4355_v43, %v4359_v45  ;;  %v880_v35 = vld [vmem:[#allocation6 + $0x480] sm:$0xff] }
 0x15c   :  { %2331 = vmatpush1.bf16.msra.mxu1 %v3554_v48  ;;  %2417 = vmatpush1.bf16.msra.mxu0 %v3556_v49  ;;  %v3621_v48 = vcombine.high %v4355_v43, %v4359_v45  ;;  %v292_v49 = vsub.s32 2, %v4338_v19 }
 0x15d   :  { %2332 = vmatprep.subr.bf16.mxu1 %v3563_v50  ;;  %2418 = vmatprep.subr.bf16.mxu0 %v3565_v51  ;;  %v280_v50 = vld [vmem:[%s4448_s4] sm:$0xf]  ;;  %v296_v51 = vsub.s32 3, %v4338_v19 }
 0x15e   :  { %v285_v52 = vrot.slane %v280_v50, %v4341_v20  ;;  %v293_v53 = vrot.slane %v280_v50, %v292_v49  ;;  %v289_v54 = vrot.slane %v280_v50, %v4347_v22 }
 0x15f   :  { %v297_v55 = vrot.slane %v280_v50, %v296_v51 }
 0x160   :  { %2333 = vmatpush1.bf16.msra.mxu1 %v3562_v56  ;;  %2419 = vmatpush1.bf16.msra.mxu0 %v3564_v57 }
 0x161   :  { %2334 = vmatprep.subr.bf16.mxu1 %v3571_v58  ;;  %2420 = vmatprep.subr.bf16.mxu0 %v3573_v59 }
 0x164   :  { %2335 = vmatpush1.bf16.msra.mxu1 %v3570_v0  ;;  %2421 = vmatpush1.bf16.msra.mxu0 %v3572_v1 }
 0x165   :  { %2336 = vmatprep.subr.bf16.mxu1 %v3579_v2  ;;  %2422 = vmatprep.subr.bf16.mxu0 %v3581_v3 }
 0x168   :  { %2337 = vmatpush1.bf16.msra.mxu1 %v3578_v8  ;;  %2423 = vmatpush1.bf16.msra.mxu0 %v3580_v9 }
 0x169   :  { %2338 = vmatprep.subr.bf16.mxu1 %v3587_v10  ;;  %2424 = vmatprep.subr.bf16.mxu0 %v3589_v11 }
 0x16c   :  { %2339 = vmatpush1.bf16.msra.mxu1 %v3586_v16  ;;  %2425 = vmatpush1.bf16.msra.mxu0 %v3588_v17 }
 0x16d   :  { %2340 = vmatprep.subr.bf16.mxu1 %v3595_v18  ;;  %2426 = vmatprep.subr.bf16.mxu0 %v3597_v21 }
 0x170   :  { %2341 = vmatpush1.bf16.msra.mxu1 %v3594_v23  ;;  %2427 = vmatpush1.bf16.msra.mxu0 %v3596_v24 }
 0x171   :  { %2342 = vmatprep.subr.bf16.mxu1 %v3603_v28  ;;  %2428 = vmatprep.subr.bf16.mxu0 %v3605_v32  ;;  %v877_v32 = vld [vmem:[#allocation6 + $0x468] sm:$0xff] }
 0x174   :  { %2343 = vmatpush1.bf16.msra.mxu1 %v3602_v30  ;;  %2429 = vmatpush1.bf16.msra.mxu0 %v3604_v31  ;;  %v876_v30 = vld [vmem:[#allocation6 + $0x460] sm:$0xff]  ;;  %v873_v31 = vld [vmem:[#allocation6 + $0x448] sm:$0xff] }
 0x175   :  { %2344 = vmatprep.subr.bf16.mxu1 %v3611_v36  ;;  %2430 = vmatprep.subr.bf16.mxu0 %v3613_v40  ;;  %v3627_v36 = vcombine.high %v872_v25, %v876_v30  ;;  %v3629_v37 = vcombine.high %v873_v31, %v877_v32  ;;  %v885_v40 = vld [vmem:[#allocation6 + $0x4a8] sm:$0xff] }
 0x178   :  { %2345 = vmatpush1.bf16.msra.mxu1 %v3610_v38  ;;  %2431 = vmatpush1.bf16.msra.mxu0 %v3612_v39  ;;  %v884_v38 = vld [vmem:[#allocation6 + $0x4a0] sm:$0xff]  ;;  %v881_v39 = vld [vmem:[#allocation6 + $0x488] sm:$0xff] }
 0x179   :  { %2357 = vmatprep.subr.bf16.mxu1 %v3619_v44  ;;  %2443 = vmatprep.subr.bf16.mxu0 %v3621_v48  ;;  %v3626_v44 = vcombine.low %v872_v25, %v876_v30  ;;  %v3628_v48 = vcombine.low %v873_v31, %v877_v32  ;;  %v3635_v50 = vcombine.high %v880_v35, %v884_v38  ;;  %v929_v30 = vld [vmem:[#allocation6 + $0x608] sm:$0xff] }
 0x17a   :  { %v3634_v41 = vcombine.low %v880_v35, %v884_v38  ;;  %v3636_v42 = vcombine.low %v881_v39, %v885_v40  ;;  %v933_v31 = vld [vmem:[#allocation6 + $0x628] sm:$0xff]  ;;  %v936_v38 = vld [vmem:[#allocation6 + $0x640] sm:$0xff] }
 0x20e   :  { %v656_v56 = vpop.f32.mrb[0].mxu1  ;;  %v699_v57 = vpop.f32.mrb[4].mxu0 }
 0x20f   :  { %v657_v58 = vadd.f32 %v656_v56, %v285_v52  ;;  %v700_v59 = vadd.f32 %v699_v57, %v293_v53  ;;  %v658_v60 = vpop.f32.mrb[1].mxu1  ;;  %v701_v61 = vpop.f32.mrb[5].mxu0  ;;  %v893_v56 = vld [vmem:[#allocation6 + $0x4e8] sm:$0xff] }
 0x210   :  { %v659_v62 = vadd.f32 %v658_v60, %v289_v54  ;;  %v702_v63 = vadd.f32 %v701_v61, %v297_v55  ;;  %v660_v0 = vpop.f32.mrb[2].mxu1  ;;  %v703_v1 = vpop.f32.mrb[6].mxu0  ;;  %v897_v57 = vld [vmem:[#allocation6 + $0x508] sm:$0xff] }
 0x211   :  { %vm708_vm5 = vcmp.gt.f32.partialorder %v657_v58, 0.0  ;;  %v716_v2 = vmul.f32 0.2, %v657_v58  ;;  %vm710_vm6 = vcmp.gt.f32.partialorder %v700_v59, 0.0  ;;  %v718_v3 = vmul.f32 0.2, %v700_v59 }
 0x212   :  { %vm709_vm7 = vcmp.gt.f32.partialorder %v659_v62, 0.0  ;;  %v717_v4 = vmul.f32 0.2, %v659_v62  ;;  %vm711_vm8 = vcmp.gt.f32.partialorder %v702_v63, 0.0  ;;  %v719_v5 = vmul.f32 0.2, %v702_v63 }
 0x213   :  { %v661_v6 = vadd.f32 %v660_v0, %v285_v52  ;;  %v704_v7 = vadd.f32 %v703_v1, %v293_v53  ;;  %v662_v8 = vpop.f32.mrb[3].mxu1  ;;  %v705_v9 = vpop.f32.mrb[7].mxu0  ;;  %v724_v10 = vsel %vm708_vm5, %v657_v58, %v716_v2  ;;  %v726_v11 = vsel %vm710_vm6, %v700_v59, %v718_v3  ;;  %v888_v53 = vld [vmem:[#allocation6 + $0x4c0] sm:$0xff]  ;;  %v901_v58 = vld [vmem:[#allocation6 + $0x528] sm:$0xff] }
 0x214   :  { %v663_v12 = vadd.f32 %v662_v8, %v289_v54  ;;  %v706_v13 = vadd.f32 %v705_v9, %v297_v55  ;;  %v725_v18 = vsel %vm709_vm7, %v659_v62, %v717_v4  ;;  %v727_v21 = vsel %vm711_vm8, %v702_v63, %v719_v5  ;;  %v892_v54 = vld [vmem:[#allocation6 + $0x4e0] sm:$0xff]  ;;  %v889_v55 = vld [vmem:[#allocation6 + $0x4c8] sm:$0xff] }
 0x215   :  { %vm712_vm9 = vcmp.gt.f32.partialorder %v661_v6, 0.0  ;;  %v720_v14 = vmul.f32 0.2, %v661_v6  ;;  %vm714_vm10 = vcmp.gt.f32.partialorder %v704_v7, 0.0  ;;  %v722_v15 = vmul.f32 0.2, %v704_v7 }
 0x216   :  { %vm713_vm11 = vcmp.gt.f32.partialorder %v663_v12, 0.0  ;;  %v721_v16 = vmul.f32 0.2, %v663_v12  ;;  %vm715_vm12 = vcmp.gt.f32.partialorder %v706_v13, 0.0  ;;  %v723_v17 = vmul.f32 0.2, %v706_v13 }
 0x217   :  { %v728_v23 = vsel %vm712_vm9, %v661_v6, %v720_v14  ;;  %v730_v24 = vsel %vm714_vm10, %v704_v7, %v722_v15  ;;  %v3637_v52 = vcombine.high %v881_v39, %v885_v40  ;;  %v3643_v43 = vcombine.high %v888_v53, %v892_v54  ;;  %v904_v63 = vld [vmem:[#allocation6 + $0x540] sm:$0xff]  ;;  %v905_v1 = vld [vmem:[#allocation6 + $0x548] sm:$0xff] }
 0x218   :  { %v4380_v26 = vpack.c.bf16 %v728_v23, %v724_v10  ;;  %v4382_v27 = vpack.c.bf16 %v730_v24, %v726_v11  ;;  %v729_v28 = vsel %vm713_vm11, %v663_v12, %v721_v16  ;;  %v731_v29 = vsel %vm715_vm12, %v706_v13, %v723_v17  ;;  %v908_v0 = vld [vmem:[#allocation6 + $0x560] sm:$0xff]  ;;  %v909_v2 = vld [vmem:[#allocation6 + $0x568] sm:$0xff] }
 0x219   :  { %v4384_v33 = vpack.c.bf16 %v729_v28, %v725_v18  ;;  %v4386_v34 = vpack.c.bf16 %v731_v29, %v727_v21  ;;  %v3645_v45 = vcombine.high %v889_v55, %v893_v56  ;;  %v3642_v59 = vcombine.low %v888_v53, %v892_v54  ;;  %v912_v7 = vld [vmem:[#allocation6 + $0x580] sm:$0xff]  ;;  %v913_v9 = vld [vmem:[#allocation6 + $0x588] sm:$0xff] }
 0x21a   :  { %v3644_v60 = vcombine.low %v889_v55, %v893_v56  ;;  %v3653_v62 = vcombine.high %v897_v57, %v901_v58  ;;  %v3652_v4 = vcombine.low %v897_v57, %v901_v58  ;;  %v3659_v5 = vcombine.high %v904_v63, %v908_v0  ;;  %v916_v8 = vld [vmem:[#allocation6 + $0x5a0] sm:$0xff]  ;;  %v917_v10 = vld [vmem:[#allocation6 + $0x5a8] sm:$0xff] }
 0x21b   :  { %2346 = vmatprep.mubr.bf16.mxu1 %v4384_v33  ;;  %2432 = vmatprep.mubr.bf16.mxu0 %v4384_v33  ;;  %v3661_v6 = vcombine.high %v905_v1, %v909_v2  ;;  %v3658_v11 = vcombine.low %v904_v63, %v908_v0  ;;  %v3660_v12 = vcombine.low %v905_v1, %v909_v2  ;;  %v920_v15 = vld [vmem:[#allocation6 + $0x5c0] sm:$0xff]  ;;  %v921_v17 = vld [vmem:[#allocation6 + $0x5c8] sm:$0xff] }
 0x21c   :  { %2347 = vmatmul.mubr.bf16.vlgmr.msra.gmra.mrb[4].mxu1 %v4380_v26  ;;  %2433 = vmatmul.mubr.bf16.vlgmr.msra.gmra.mrb[8].mxu0 %v4380_v26  ;;  %v3667_v13 = vcombine.high %v912_v7, %v916_v8  ;;  %v3669_v14 = vcombine.high %v913_v9, %v917_v10  ;;  %v924_v16 = vld [vmem:[#allocation6 + $0x5e0] sm:$0xff]  ;;  %v925_v18 = vld [vmem:[#allocation6 + $0x5e8] sm:$0xff]  ;;  %v3666_v21 = vcombine.low %v912_v7, %v916_v8 }
 0x21d   :  { %2358 = vmatpush1.bf16.msra.mxu1 %v3618_v46  ;;  %2444 = vmatpush1.bf16.msra.mxu0 %v3620_v47  ;;  %v896_v46 = vld [vmem:[#allocation6 + $0x500] sm:$0xff]  ;;  %v3668_v23 = vcombine.low %v913_v9, %v917_v10  ;;  %v3675_v24 = vcombine.high %v920_v15, %v924_v16  ;;  %v3677_v25 = vcombine.high %v921_v17, %v925_v18  ;;  %v937_v40 = vld [vmem:[#allocation6 + $0x648] sm:$0xff] }
 0x21e   :  { %2389 = vmatprep.mubr.bf16.mxu1 %v4386_v34  ;;  %2475 = vmatprep.mubr.bf16.mxu0 %v4386_v34  ;;  %v900_v47 = vld [vmem:[#allocation6 + $0x520] sm:$0xff]  ;;  %v3674_v32 = vcombine.low %v920_v15, %v924_v16  ;;  %v3676_v35 = vcombine.low %v921_v17, %v925_v18  ;;  %v945_v56 = vld [vmem:[#allocation6 + $0x688] sm:$0xff] }
 0x21f   :  { %2359 = vmatprep.subr.bf16.mxu1 %v3627_v36  ;;  %2445 = vmatprep.subr.bf16.mxu0 %v3629_v37  ;;  %v3651_v61 = vcombine.high %v896_v46, %v900_v47  ;;  %v3650_v3 = vcombine.low %v896_v46, %v900_v47  ;;  %v928_v28 = vld [vmem:[#allocation6 + $0x600] sm:$0xff]  ;;  %v3685_v37 = vcombine.high %v929_v30, %v933_v31  ;;  %v953_v58 = vld [vmem:[#allocation6 + $0x6c8] sm:$0xff] }
 0x220   :  { %v932_v29 = vld [vmem:[#allocation6 + $0x620] sm:$0xff]  ;;  %v961_v2 = vld [vmem:[#allocation6 + $0x708] sm:$0xff] }
 0x221   :  { %2360 = vmatpush1.bf16.msra.mxu1 %v3626_v44  ;;  %2446 = vmatpush1.bf16.msra.mxu0 %v3628_v48  ;;  %v3683_v36 = vcombine.high %v928_v28, %v932_v29  ;;  %v940_v39 = vld [vmem:[#allocation6 + $0x660] sm:$0xff]  ;;  %v941_v44 = vld [vmem:[#allocation6 + $0x668] sm:$0xff]  ;;  %v3682_v48 = vcombine.low %v928_v28, %v932_v29 }
 0x222   :  { %2361 = vmatprep.subr.bf16.mxu1 %v3635_v50  ;;  %2447 = vmatprep.subr.bf16.mxu0 %v3637_v52  ;;  %v3684_v50 = vcombine.low %v929_v30, %v933_v31  ;;  %v3691_v52 = vcombine.high %v936_v38, %v940_v39  ;;  %v3693_v53 = vcombine.high %v937_v40, %v941_v44  ;;  %v944_v54 = vld [vmem:[#allocation6 + $0x680] sm:$0xff]  ;;  %v969_v10 = vld [vmem:[#allocation6 + $0x748] sm:$0xff] }
 0x223   :  { %v948_v55 = vld [vmem:[#allocation6 + $0x6a0] sm:$0xff]  ;;  %v977_v18 = vld [vmem:[#allocation6 + $0x788] sm:$0xff] }
 0x224   :  { %v952_v47 = vld [vmem:[#allocation6 + $0x6c0] sm:$0xff]  ;;  %v985_v31 = vld [vmem:[#allocation6 + $0x7c8] sm:$0xff] }
 0x225   :  { %2362 = vmatpush1.bf16.msra.mxu1 %v3634_v41  ;;  %2448 = vmatpush1.bf16.msra.mxu0 %v3636_v42  ;;  %v949_v41 = vld [vmem:[#allocation6 + $0x6a8] sm:$0xff]  ;;  %v3690_v42 = vcombine.low %v936_v38, %v940_v39  ;;  %v956_v57 = vld [vmem:[#allocation6 + $0x6e0] sm:$0xff]  ;;  %v738_v39 = vld [vmem:[#allocation6 + $0x10] sm:$0xff] }
 0x226   :  { %2363 = vmatprep.subr.bf16.mxu1 %v3643_v43  ;;  %2449 = vmatprep.subr.bf16.mxu0 %v3645_v45  ;;  %v3692_v43 = vcombine.low %v937_v40, %v941_v44  ;;  %v3699_v45 = vcombine.high %v944_v54, %v948_v55  ;;  %v3701_v46 = vcombine.high %v945_v56, %v949_v41  ;;  %v960_v0 = vld [vmem:[#allocation6 + $0x700] sm:$0xff]  ;;  %v742_v40 = vld [vmem:[#allocation6 + $0x30] sm:$0xff]  ;;  %v739_v44 = vld [vmem:[#allocation6 + $0x18] sm:$0xff] }
 0x227   :  { %v964_v1 = vld [vmem:[#allocation6 + $0x720] sm:$0xff] }
 0x228   :  { %v968_v8 = vld [vmem:[#allocation6 + $0x740] sm:$0xff] }
 0x229   :  { %2364 = vmatpush1.bf16.msra.mxu1 %v3642_v59  ;;  %2450 = vmatpush1.bf16.msra.mxu0 %v3644_v60  ;;  %v957_v59 = vld [vmem:[#allocation6 + $0x6e8] sm:$0xff]  ;;  %v3698_v60 = vcombine.low %v944_v54, %v948_v55  ;;  %v972_v9 = vld [vmem:[#allocation6 + $0x760] sm:$0xff]  ;;  %v746_v55 = vld [vmem:[#allocation6 + $0x50] sm:$0xff] }
 0x22a   :  { %2365 = vmatprep.subr.bf16.mxu1 %v3651_v61  ;;  %2451 = vmatprep.subr.bf16.mxu0 %v3653_v62  ;;  %v3700_v61 = vcombine.low %v945_v56, %v949_v41  ;;  %v3707_v62 = vcombine.high %v952_v47, %v956_v57  ;;  %v3709_v63 = vcombine.high %v953_v58, %v957_v59  ;;  %v976_v16 = vld [vmem:[#allocation6 + $0x780] sm:$0xff]  ;;  %v750_v56 = vld [vmem:[#allocation6 + $0x70] sm:$0xff]  ;;  %v747_v41 = vld [vmem:[#allocation6 + $0x58] sm:$0xff] }
 0x22b   :  { %v980_v17 = vld [vmem:[#allocation6 + $0x7a0] sm:$0xff] }
 0x22c   :  { %v984_v29 = vld [vmem:[#allocation6 + $0x7c0] sm:$0xff] }
 0x22d   :  { %2366 = vmatpush1.bf16.msra.mxu1 %v3650_v3  ;;  %2452 = vmatpush1.bf16.msra.mxu0 %v3652_v4  ;;  %v965_v3 = vld [vmem:[#allocation6 + $0x728] sm:$0xff]  ;;  %v3706_v4 = vcombine.low %v952_v47, %v956_v57  ;;  %v988_v30 = vld [vmem:[#allocation6 + $0x7e0] sm:$0xff]  ;;  %v754_v57 = vld [vmem:[#allocation6 + $0x90] sm:$0xff] }
 0x22e   :  { %2367 = vmatprep.subr.bf16.mxu1 %v3659_v5  ;;  %2453 = vmatprep.subr.bf16.mxu0 %v3661_v6  ;;  %v3708_v5 = vcombine.low %v953_v58, %v957_v59  ;;  %v3715_v6 = vcombine.high %v960_v0, %v964_v1  ;;  %v3717_v7 = vcombine.high %v961_v2, %v965_v3  ;;  %v758_v58 = vld [vmem:[#allocation6 + $0xb0] sm:$0xff]  ;;  %v755_v59 = vld [vmem:[#allocation6 + $0x98] sm:$0xff] }
 0x231   :  { %2368 = vmatpush1.bf16.msra.mxu1 %v3658_v11  ;;  %2454 = vmatpush1.bf16.msra.mxu0 %v3660_v12  ;;  %v973_v11 = vld [vmem:[#allocation6 + $0x768] sm:$0xff]  ;;  %v3714_v12 = vcombine.low %v960_v0, %v964_v1  ;;  %v762_v1 = vld [vmem:[#allocation6 + $0xd0] sm:$0xff] }
 0x232   :  { %2369 = vmatprep.subr.bf16.mxu1 %v3667_v13  ;;  %2455 = vmatprep.subr.bf16.mxu0 %v3669_v14  ;;  %v3716_v13 = vcombine.low %v961_v2, %v965_v3  ;;  %v3723_v14 = vcombine.high %v968_v8, %v972_v9  ;;  %v3725_v15 = vcombine.high %v969_v10, %v973_v11  ;;  %v766_v2 = vld [vmem:[#allocation6 + $0xf0] sm:$0xff]  ;;  %v763_v3 = vld [vmem:[#allocation6 + $0xd8] sm:$0xff] }
 0x235   :  { %2370 = vmatpush1.bf16.msra.mxu1 %v3666_v21  ;;  %2456 = vmatpush1.bf16.msra.mxu0 %v3668_v23  ;;  %v981_v21 = vld [vmem:[#allocation6 + $0x7a8] sm:$0xff]  ;;  %v3722_v23 = vcombine.low %v968_v8, %v972_v9  ;;  %v770_v9 = vld [vmem:[#allocation6 + $0x110] sm:$0xff] }
 0x236   :  { %2371 = vmatprep.subr.bf16.mxu1 %v3675_v24  ;;  %2457 = vmatprep.subr.bf16.mxu0 %v3677_v25  ;;  %v3724_v24 = vcombine.low %v969_v10, %v973_v11  ;;  %v3731_v25 = vcombine.high %v976_v16, %v980_v17  ;;  %v3733_v28 = vcombine.high %v977_v18, %v981_v21  ;;  %v774_v10 = vld [vmem:[#allocation6 + $0x130] sm:$0xff]  ;;  %v775_v11 = vld [vmem:[#allocation6 + $0x138] sm:$0xff] }
 0x239   :  { %2372 = vmatpush1.bf16.msra.mxu1 %v3674_v32  ;;  %2458 = vmatpush1.bf16.msra.mxu0 %v3676_v35  ;;  %v989_v32 = vld [vmem:[#allocation6 + $0x7e8] sm:$0xff]  ;;  %v3730_v35 = vcombine.low %v976_v16, %v980_v17  ;;  %v778_v16 = vld [vmem:[#allocation6 + $0x150] sm:$0xff] }
 0x23a   :  { %2373 = vmatprep.subr.bf16.mxu1 %v3683_v36  ;;  %2459 = vmatprep.subr.bf16.mxu0 %v3685_v37  ;;  %v3732_v36 = vcombine.low %v977_v18, %v981_v21  ;;  %v3739_v37 = vcombine.high %v984_v29, %v988_v30  ;;  %v3741_v38 = vcombine.high %v985_v31, %v989_v32  ;;  %v782_v17 = vld [vmem:[#allocation6 + $0x170] sm:$0xff]  ;;  %v779_v18 = vld [vmem:[#allocation6 + $0x158] sm:$0xff] }
 0x23b   :  { %v783_v21 = vld [vmem:[#allocation6 + $0x178] sm:$0xff] }
 0x23d   :  { %2374 = vmatpush1.bf16.msra.mxu1 %v3682_v48  ;;  %2460 = vmatpush1.bf16.msra.mxu0 %v3684_v50  ;;  %v743_v48 = vld [vmem:[#allocation6 + $0x38] sm:$0xff]  ;;  %v3738_v50 = vcombine.low %v984_v29, %v988_v30  ;;  %v786_v29 = vld [vmem:[#allocation6 + $0x190] sm:$0xff] }
 0x23e   :  { %2375 = vmatprep.subr.bf16.mxu1 %v3691_v52  ;;  %2461 = vmatprep.subr.bf16.mxu0 %v3693_v53  ;;  %v3740_v52 = vcombine.low %v985_v31, %v989_v32  ;;  %v3495_v53 = vcombine.high %v738_v39, %v742_v40  ;;  %v3497_v54 = vcombine.high %v739_v44, %v743_v48  ;;  %v790_v30 = vld [vmem:[#allocation6 + $0x1b0] sm:$0xff]  ;;  %v787_v31 = vld [vmem:[#allocation6 + $0x198] sm:$0xff] }
 0x23f   :  { %v791_v32 = vld [vmem:[#allocation6 + $0x1b8] sm:$0xff] }
 0x241   :  { %2376 = vmatpush1.bf16.msra.mxu1 %v3690_v42  ;;  %2462 = vmatpush1.bf16.msra.mxu0 %v3692_v43  ;;  %v751_v42 = vld [vmem:[#allocation6 + $0x78] sm:$0xff]  ;;  %v3494_v43 = vcombine.low %v738_v39, %v742_v40  ;;  %v794_v39 = vld [vmem:[#allocation6 + $0x1d0] sm:$0xff] }
 0x242   :  { %2377 = vmatprep.subr.bf16.mxu1 %v3699_v45  ;;  %2463 = vmatprep.subr.bf16.mxu0 %v3701_v46  ;;  %v3496_v45 = vcombine.low %v739_v44, %v743_v48  ;;  %v3503_v46 = vcombine.high %v746_v55, %v750_v56  ;;  %v3505_v47 = vcombine.high %v747_v41, %v751_v42  ;;  %v798_v40 = vld [vmem:[#allocation6 + $0x1f0] sm:$0xff]  ;;  %v795_v44 = vld [vmem:[#allocation6 + $0x1d8] sm:$0xff] }
 0x243   :  { %v799_v48 = vld [vmem:[#allocation6 + $0x1f8] sm:$0xff] }
 0x245   :  { %2378 = vmatpush1.bf16.msra.mxu1 %v3698_v60  ;;  %2464 = vmatpush1.bf16.msra.mxu0 %v3700_v61  ;;  %v759_v60 = vld [vmem:[#allocation6 + $0xb8] sm:$0xff]  ;;  %v3502_v61 = vcombine.low %v746_v55, %v750_v56  ;;  %v802_v55 = vld [vmem:[#allocation6 + $0x210] sm:$0xff] }
 0x246   :  { %2379 = vmatprep.subr.bf16.mxu1 %v3707_v62  ;;  %2465 = vmatprep.subr.bf16.mxu0 %v3709_v63  ;;  %v3504_v62 = vcombine.low %v747_v41, %v751_v42  ;;  %v3511_v63 = vcombine.high %v754_v57, %v758_v58  ;;  %v3513_v0 = vcombine.high %v755_v59, %v759_v60  ;;  %v806_v56 = vld [vmem:[#allocation6 + $0x230] sm:$0xff]  ;;  %v803_v41 = vld [vmem:[#allocation6 + $0x218] sm:$0xff] }
 0x247   :  { %v807_v42 = vld [vmem:[#allocation6 + $0x238] sm:$0xff] }
 0x249   :  { %2380 = vmatpush1.bf16.msra.mxu1 %v3706_v4  ;;  %2466 = vmatpush1.bf16.msra.mxu0 %v3708_v5  ;;  %v767_v4 = vld [vmem:[#allocation6 + $0xf8] sm:$0xff]  ;;  %v3510_v5 = vcombine.low %v754_v57, %v758_v58  ;;  %v810_v57 = vld [vmem:[#allocation6 + $0x250] sm:$0xff] }
 0x24a   :  { %2381 = vmatprep.subr.bf16.mxu1 %v3715_v6  ;;  %2467 = vmatprep.subr.bf16.mxu0 %v3717_v7  ;;  %v3512_v6 = vcombine.low %v755_v59, %v759_v60  ;;  %v3519_v7 = vcombine.high %v762_v1, %v766_v2  ;;  %v3521_v8 = vcombine.high %v763_v3, %v767_v4  ;;  %v814_v58 = vld [vmem:[#allocation6 + $0x270] sm:$0xff]  ;;  %v811_v59 = vld [vmem:[#allocation6 + $0x258] sm:$0xff] }
 0x24b   :  { %v815_v60 = vld [vmem:[#allocation6 + $0x278] sm:$0xff] }
 0x24d   :  { %2382 = vmatpush1.bf16.msra.mxu1 %v3714_v12  ;;  %2468 = vmatpush1.bf16.msra.mxu0 %v3716_v13  ;;  %v3518_v12 = vcombine.low %v762_v1, %v766_v2  ;;  %v3520_v13 = vcombine.low %v763_v3, %v767_v4  ;;  %v818_v1 = vld [vmem:[#allocation6 + $0x290] sm:$0xff]  ;;  %v819_v3 = vld [vmem:[#allocation6 + $0x298] sm:$0xff] }
 0x24e   :  { %2383 = vmatprep.subr.bf16.mxu1 %v3723_v14  ;;  %2469 = vmatprep.subr.bf16.mxu0 %v3725_v15  ;;  %v3527_v14 = vcombine.high %v770_v9, %v774_v10  ;;  %v822_v2 = vld [vmem:[#allocation6 + $0x2b0] sm:$0xff]  ;;  %v823_v4 = vld [vmem:[#allocation6 + $0x2b8] sm:$0xff] }
 0x251   :  { %2384 = vmatpush1.bf16.msra.mxu1 %v3722_v23  ;;  %2470 = vmatpush1.bf16.msra.mxu0 %v3724_v24  ;;  %v3526_v23 = vcombine.low %v770_v9, %v774_v10  ;;  %v826_v9 = vld [vmem:[#allocation6 + $0x2d0] sm:$0xff] }
 0x252   :  { %2385 = vmatprep.subr.bf16.mxu1 %v3731_v25  ;;  %2471 = vmatprep.subr.bf16.mxu0 %v3733_v28  ;;  %v3535_v25 = vcombine.high %v778_v16, %v782_v17  ;;  %v3537_v28 = vcombine.high %v779_v18, %v783_v21  ;;  %v830_v10 = vld [vmem:[#allocation6 + $0x2f0] sm:$0xff] }
 0x255   :  { %2386 = vmatpush1.bf16.msra.mxu1 %v3730_v35  ;;  %2472 = vmatpush1.bf16.msra.mxu0 %v3732_v36  ;;  %v3534_v35 = vcombine.low %v778_v16, %v782_v17  ;;  %v3536_v36 = vcombine.low %v779_v18, %v783_v21  ;;  %v834_v16 = vld [vmem:[#allocation6 + $0x310] sm:$0xff]  ;;  %v835_v18 = vld [vmem:[#allocation6 + $0x318] sm:$0xff] }
 0x256   :  { %2387 = vmatprep.subr.bf16.mxu1 %v3739_v37  ;;  %2473 = vmatprep.subr.bf16.mxu0 %v3741_v38  ;;  %v3543_v37 = vcombine.high %v786_v29, %v790_v30  ;;  %v3545_v38 = vcombine.high %v787_v31, %v791_v32  ;;  %v838_v17 = vld [vmem:[#allocation6 + $0x330] sm:$0xff]  ;;  %v839_v21 = vld [vmem:[#allocation6 + $0x338] sm:$0xff] }
 0x259   :  { %2388 = vmatpush1.bf16.msra.mxu1 %v3738_v50  ;;  %2474 = vmatpush1.bf16.msra.mxu0 %v3740_v52  ;;  %v3542_v50 = vcombine.low %v786_v29, %v790_v30  ;;  %v3544_v52 = vcombine.low %v787_v31, %v791_v32  ;;  %v842_v29 = vld [vmem:[#allocation6 + $0x350] sm:$0xff]  ;;  %v843_v31 = vld [vmem:[#allocation6 + $0x358] sm:$0xff] }
 0x25a   :  { %2486 = vmatprep.subr.bf16.mxu1 %v3495_v53  ;;  %2572 = vmatprep.subr.bf16.mxu0 %v3497_v54  ;;  %v3551_v53 = vcombine.high %v794_v39, %v798_v40  ;;  %v3553_v54 = vcombine.high %v795_v44, %v799_v48  ;;  %v846_v30 = vld [vmem:[#allocation6 + $0x370] sm:$0xff]  ;;  %v847_v32 = vld [vmem:[#allocation6 + $0x378] sm:$0xff] }
 0x25c   :  { %2390 = vmatmul.mubr.bf16.vlgmr.msra.gmra.mrb[4].mxu1 %v4382_v27  ;;  %2476 = vmatmul.mubr.bf16.vlgmr.msra.gmra.mrb[8].mxu0 %v4382_v27 }
 0x25d   :  { %2487 = vmatpush1.bf16.msra.mxu1 %v3494_v43  ;;  %2518 = vmatprep.mubr.bf16.mxu1 %v4384_v33  ;;  %v3550_v43 = vcombine.low %v794_v39, %v798_v40  ;;  %v850_v39 = vld [vmem:[#allocation6 + $0x390] sm:$0xff] }
 0x25e   :  { %2573 = vmatpush1.bf16.msra.mxu0 %v3496_v45  ;;  %2604 = vmatprep.mubr.bf16.mxu0 %v4384_v33  ;;  %v771_v33 = vld [vmem:[#allocation6 + $0x118] sm:$0xff]  ;;  %v3552_v45 = vcombine.low %v795_v44, %v799_v48  ;;  %v854_v40 = vld [vmem:[#allocation6 + $0x3b0] sm:$0xff] }
 0x25f   :  { %2488 = vmatprep.subr.bf16.mxu1 %v3503_v46  ;;  %2574 = vmatprep.subr.bf16.mxu0 %v3505_v47  ;;  %v3529_v15 = vcombine.high %v771_v33, %v775_v11  ;;  %v3528_v24 = vcombine.low %v771_v33, %v775_v11  ;;  %v3559_v46 = vcombine.high %v802_v55, %v806_v56  ;;  %v827_v33 = vld [vmem:[#allocation6 + $0x2d8] sm:$0xff] }
 0x260   :  { %v3561_v47 = vcombine.high %v803_v41, %v807_v42  ;;  %v831_v11 = vld [vmem:[#allocation6 + $0x2f8] sm:$0xff] }
 0x261   :  { %2489 = vmatpush1.bf16.msra.mxu1 %v3502_v61  ;;  %v3558_v61 = vcombine.low %v802_v55, %v806_v56  ;;  %v851_v44 = vld [vmem:[#allocation6 + $0x398] sm:$0xff]  ;;  %v858_v55 = vld [vmem:[#allocation6 + $0x3d0] sm:$0xff] }
 0x262   :  { %2575 = vmatpush1.bf16.msra.mxu0 %v3504_v62  ;;  %2490 = vmatprep.subr.bf16.mxu1 %v3511_v63  ;;  %v3560_v62 = vcombine.low %v803_v41, %v807_v42  ;;  %v3567_v63 = vcombine.high %v810_v57, %v814_v58  ;;  %v855_v48 = vld [vmem:[#allocation6 + $0x3b8] sm:$0xff]  ;;  %v862_v56 = vld [vmem:[#allocation6 + $0x3f0] sm:$0xff] }
 0x263   :  { %2576 = vmatprep.subr.bf16.mxu0 %v3513_v0  ;;  %v3569_v0 = vcombine.high %v811_v59, %v815_v60  ;;  %v859_v41 = vld [vmem:[#allocation6 + $0x3d8] sm:$0xff] }
 0x264   :  { %v863_v42 = vld [vmem:[#allocation6 + $0x3f8] sm:$0xff] }
 0x265   :  { %2491 = vmatpush1.bf16.msra.mxu1 %v3510_v5  ;;  %v3566_v5 = vcombine.low %v810_v57, %v814_v58  ;;  %v866_v57 = vld [vmem:[#allocation6 + $0x410] sm:$0xff] }
 0x266   :  { %2577 = vmatpush1.bf16.msra.mxu0 %v3512_v6  ;;  %2492 = vmatprep.subr.bf16.mxu1 %v3519_v7  ;;  %v3568_v6 = vcombine.low %v811_v59, %v815_v60  ;;  %v3575_v7 = vcombine.high %v818_v1, %v822_v2  ;;  %v870_v58 = vld [vmem:[#allocation6 + $0x430] sm:$0xff]  ;;  %v867_v59 = vld [vmem:[#allocation6 + $0x418] sm:$0xff] }
 0x267   :  { %2578 = vmatprep.subr.bf16.mxu0 %v3521_v8  ;;  %v3577_v8 = vcombine.high %v819_v3, %v823_v4  ;;  %v871_v60 = vld [vmem:[#allocation6 + $0x438] sm:$0xff] }
 0x269   :  { %2493 = vmatpush1.bf16.msra.mxu1 %v3518_v12  ;;  %v3574_v12 = vcombine.low %v818_v1, %v822_v2  ;;  %v874_v1 = vld [vmem:[#allocation6 + $0x450] sm:$0xff] }
 0x26a   :  { %2579 = vmatpush1.bf16.msra.mxu0 %v3520_v13  ;;  %2494 = vmatprep.subr.bf16.mxu1 %v3527_v14  ;;  %v3576_v13 = vcombine.low %v819_v3, %v823_v4  ;;  %v3583_v14 = vcombine.high %v826_v9, %v830_v10  ;;  %v878_v2 = vld [vmem:[#allocation6 + $0x470] sm:$0xff]  ;;  %v3622_v3 = vcombine.low %v866_v57, %v870_v58  ;;  %v875_v4 = vld [vmem:[#allocation6 + $0x458] sm:$0xff] }
 0x26b   :  { %2580 = vmatprep.subr.bf16.mxu0 %v3529_v15  ;;  %v3585_v15 = vcombine.high %v827_v33, %v831_v11 }
 0x26d   :  { %2495 = vmatpush1.bf16.msra.mxu1 %v3526_v23  ;;  %v3582_v23 = vcombine.low %v826_v9, %v830_v10  ;;  %v886_v9 = vld [vmem:[#allocation6 + $0x4b0] sm:$0xff] }
 0x26e   :  { %2581 = vmatpush1.bf16.msra.mxu0 %v3528_v24  ;;  %2496 = vmatprep.subr.bf16.mxu1 %v3535_v25  ;;  %v3584_v24 = vcombine.low %v827_v33, %v831_v11  ;;  %v3591_v25 = vcombine.high %v834_v16, %v838_v17  ;;  %v883_v33 = vld [vmem:[#allocation6 + $0x498] sm:$0xff] }
 0x26f   :  { %2582 = vmatprep.subr.bf16.mxu0 %v3537_v28  ;;  %v3593_v28 = vcombine.high %v835_v18, %v839_v21  ;;  %v887_v11 = vld [vmem:[#allocation6 + $0x4b8] sm:$0xff] }
 0x271   :  { %2497 = vmatpush1.bf16.msra.mxu1 %v3534_v35  ;;  %v3590_v35 = vcombine.low %v834_v16, %v838_v17  ;;  %v890_v16 = vld [vmem:[#allocation6 + $0x4d0] sm:$0xff] }
 0x272   :  { %2583 = vmatpush1.bf16.msra.mxu0 %v3536_v36  ;;  %2498 = vmatprep.subr.bf16.mxu1 %v3543_v37  ;;  %v3592_v36 = vcombine.low %v835_v18, %v839_v21  ;;  %v3599_v37 = vcombine.high %v842_v29, %v846_v30  ;;  %v894_v17 = vld [vmem:[#allocation6 + $0x4f0] sm:$0xff]  ;;  %v891_v18 = vld [vmem:[#allocation6 + $0x4d8] sm:$0xff] }
 0x273   :  { %2584 = vmatprep.subr.bf16.mxu0 %v3545_v38  ;;  %v3601_v38 = vcombine.high %v843_v31, %v847_v32  ;;  %v895_v21 = vld [vmem:[#allocation6 + $0x4f8] sm:$0xff] }
 0x275   :  { %2499 = vmatpush1.bf16.msra.mxu1 %v3542_v50  ;;  %v3598_v50 = vcombine.low %v842_v29, %v846_v30  ;;  %v902_v29 = vld [vmem:[#allocation6 + $0x530] sm:$0xff]  ;;  %v899_v30 = vld [vmem:[#allocation6 + $0x518] sm:$0xff] }
 0x276   :  { %2585 = vmatpush1.bf16.msra.mxu0 %v3544_v52  ;;  %2500 = vmatprep.subr.bf16.mxu1 %v3551_v53  ;;  %v3600_v52 = vcombine.low %v843_v31, %v847_v32  ;;  %v3607_v53 = vcombine.high %v850_v39, %v854_v40  ;;  %v903_v31 = vld [vmem:[#allocation6 + $0x538] sm:$0xff]  ;;  %v3648_v32 = vcombine.low %v891_v18, %v895_v21 }
 0x277   :  { %2586 = vmatprep.subr.bf16.mxu0 %v3553_v54  ;;  %v3609_v54 = vcombine.high %v851_v44, %v855_v48 }
 0x279   :  { %2501 = vmatpush1.bf16.msra.mxu1 %v3550_v43  ;;  %v3606_v43 = vcombine.low %v850_v39, %v854_v40  ;;  %v907_v39 = vld [vmem:[#allocation6 + $0x558] sm:$0xff] }
 0x27a   :  { %2587 = vmatpush1.bf16.msra.mxu0 %v3552_v45  ;;  %2502 = vmatprep.subr.bf16.mxu1 %v3559_v46  ;;  %v3608_v45 = vcombine.low %v851_v44, %v855_v48  ;;  %v3615_v46 = vcombine.high %v858_v55, %v862_v56  ;;  %v911_v40 = vld [vmem:[#allocation6 + $0x578] sm:$0xff]  ;;  %v3656_v48 = vcombine.low %v899_v30, %v903_v31 }
 0x27b   :  { %2588 = vmatprep.subr.bf16.mxu0 %v3561_v47  ;;  %v3617_v47 = vcombine.high %v859_v41, %v863_v42 }
 0x27d   :  { %2503 = vmatpush1.bf16.msra.mxu1 %v3558_v61  ;;  %v3614_v61 = vcombine.low %v858_v55, %v862_v56  ;;  %v915_v55 = vld [vmem:[#allocation6 + $0x598] sm:$0xff] }
 0x27e   :  { %2589 = vmatpush1.bf16.msra.mxu0 %v3560_v62  ;;  %2504 = vmatprep.subr.bf16.mxu1 %v3567_v63  ;;  %v3616_v62 = vcombine.low %v859_v41, %v863_v42  ;;  %v3623_v63 = vcombine.high %v866_v57, %v870_v58  ;;  %v919_v56 = vld [vmem:[#allocation6 + $0x5b8] sm:$0xff]  ;;  %v3664_v42 = vcombine.low %v907_v39, %v911_v40 }
 0x27f   :  { %2590 = vmatprep.subr.bf16.mxu0 %v3569_v0  ;;  %v3625_v0 = vcombine.high %v867_v59, %v871_v60  ;;  %v923_v57 = vld [vmem:[#allocation6 + $0x5d8] sm:$0xff] }
 0x280   :  { %v927_v58 = vld [vmem:[#allocation6 + $0x5f8] sm:$0xff] }
 0x281   :  { %2505 = vmatpush1.bf16.msra.mxu1 %v3566_v5  ;;  %v879_v5 = vld [vmem:[#allocation6 + $0x478] sm:$0xff] }
 0x282   :  { %2591 = vmatpush1.bf16.msra.mxu0 %v3568_v6  ;;  %2506 = vmatprep.subr.bf16.mxu1 %v3575_v7  ;;  %v3624_v6 = vcombine.low %v867_v59, %v871_v60  ;;  %v3631_v7 = vcombine.high %v874_v1, %v878_v2  ;;  %v3633_v10 = vcombine.high %v875_v4, %v879_v5 }
 0x283   :  { %2592 = vmatprep.subr.bf16.mxu0 %v3577_v8  ;;  %v882_v8 = vld [vmem:[#allocation6 + $0x490] sm:$0xff]  ;;  %v3672_v60 = vcombine.low %v915_v55, %v919_v56 }
 0x285   :  { %2507 = vmatpush1.bf16.msra.mxu1 %v3574_v12  ;;  %v3630_v12 = vcombine.low %v874_v1, %v878_v2  ;;  %v931_v1 = vld [vmem:[#allocation6 + $0x618] sm:$0xff] }
 0x286   :  { %2593 = vmatpush1.bf16.msra.mxu0 %v3576_v13  ;;  %2508 = vmatprep.subr.bf16.mxu1 %v3583_v14  ;;  %v3632_v13 = vcombine.low %v875_v4, %v879_v5  ;;  %v3639_v14 = vcombine.high %v882_v8, %v886_v9  ;;  %v935_v2 = vld [vmem:[#allocation6 + $0x638] sm:$0xff]  ;;  %v3680_v4 = vcombine.low %v923_v57, %v927_v58 }
 0x287   :  { %2594 = vmatprep.subr.bf16.mxu0 %v3585_v15  ;;  %v3641_v15 = vcombine.high %v883_v33, %v887_v11 }
 0x289   :  { %2509 = vmatpush1.bf16.msra.mxu1 %v3582_v23  ;;  %v3638_v23 = vcombine.low %v882_v8, %v886_v9  ;;  %v942_v8 = vld [vmem:[#allocation6 + $0x670] sm:$0xff]  ;;  %v939_v9 = vld [vmem:[#allocation6 + $0x658] sm:$0xff] }
 0x28a   :  { %2595 = vmatpush1.bf16.msra.mxu0 %v3584_v24  ;;  %2510 = vmatprep.subr.bf16.mxu1 %v3591_v25  ;;  %v3647_v24 = vcombine.high %v890_v16, %v894_v17  ;;  %v3649_v25 = vcombine.high %v891_v18, %v895_v21 }
 0x28b   :  { %2596 = vmatprep.subr.bf16.mxu0 %v3593_v28  ;;  %v898_v28 = vld [vmem:[#allocation6 + $0x510] sm:$0xff] }
 0x28c   :  { %v3654_v44 = vcombine.low %v898_v28, %v902_v29 }
 0x28d   :  { %2511 = vmatpush1.bf16.msra.mxu1 %v3590_v35  ;;  %v3655_v35 = vcombine.high %v898_v28, %v902_v29  ;;  %v955_v28 = vld [vmem:[#allocation6 + $0x6d8] sm:$0xff] }
 0x28e   :  { %2597 = vmatpush1.bf16.msra.mxu0 %v3592_v36  ;;  %2512 = vmatprep.subr.bf16.mxu1 %v3599_v37  ;;  %v3657_v36 = vcombine.high %v899_v30, %v903_v31  ;;  %v906_v37 = vld [vmem:[#allocation6 + $0x550] sm:$0xff]  ;;  %v959_v29 = vld [vmem:[#allocation6 + $0x6f8] sm:$0xff] }
 0x28f   :  { %2598 = vmatprep.subr.bf16.mxu0 %v3601_v38  ;;  %v910_v38 = vld [vmem:[#allocation6 + $0x570] sm:$0xff] }
 0x290   :  { %v3662_v41 = vcombine.low %v906_v37, %v910_v38 }
 0x291   :  { %2513 = vmatpush1.bf16.msra.mxu1 %v3598_v50  ;;  %v3663_v50 = vcombine.high %v906_v37, %v910_v38  ;;  %v963_v37 = vld [vmem:[#allocation6 + $0x718] sm:$0xff] }
 0x292   :  { %2599 = vmatpush1.bf16.msra.mxu0 %v3600_v52  ;;  %2514 = vmatprep.subr.bf16.mxu1 %v3607_v53  ;;  %v3665_v52 = vcombine.high %v907_v39, %v911_v40  ;;  %v914_v53 = vld [vmem:[#allocation6 + $0x590] sm:$0xff]  ;;  %v967_v38 = vld [vmem:[#allocation6 + $0x738] sm:$0xff]  ;;  %v3712_v40 = vcombine.low %v955_v28, %v959_v29 }
 0x293   :  { %2600 = vmatprep.subr.bf16.mxu0 %v3609_v54  ;;  %v918_v54 = vld [vmem:[#allocation6 + $0x5b0] sm:$0xff] }
 0x294   :  { %v3670_v59 = vcombine.low %v914_v53, %v918_v54 }
 0x295   :  { %2515 = vmatpush1.bf16.msra.mxu1 %v3606_v43  ;;  %v3671_v43 = vcombine.high %v914_v53, %v918_v54  ;;  %v971_v53 = vld [vmem:[#allocation6 + $0x758] sm:$0xff] }
 0x296   :  { %2601 = vmatpush1.bf16.msra.mxu0 %v3608_v45  ;;  %2516 = vmatprep.subr.bf16.mxu1 %v3615_v46  ;;  %v3673_v45 = vcombine.high %v915_v55, %v919_v56  ;;  %v922_v46 = vld [vmem:[#allocation6 + $0x5d0] sm:$0xff]  ;;  %v975_v54 = vld [vmem:[#allocation6 + $0x778] sm:$0xff]  ;;  %v3720_v56 = vcombine.low %v963_v37, %v967_v38 }
 0x297   :  { %2602 = vmatprep.subr.bf16.mxu0 %v3617_v47  ;;  %v926_v47 = vld [vmem:[#allocation6 + $0x5f0] sm:$0xff] }
 0x299   :  { %2517 = vmatpush1.bf16.msra.mxu1 %v3614_v61  ;;  %v3679_v61 = vcombine.high %v922_v46, %v926_v47 }
 0x29a   :  { %2603 = vmatpush1.bf16.msra.mxu0 %v3616_v62  ;;  %2529 = vmatprep.subr.bf16.mxu1 %v3623_v63  ;;  %v3681_v62 = vcombine.high %v923_v57, %v927_v58  ;;  %v930_v63 = vld [vmem:[#allocation6 + $0x610] sm:$0xff]  ;;  %v3728_v58 = vcombine.low %v971_v53, %v975_v54 }
 0x29b   :  { %2615 = vmatprep.subr.bf16.mxu0 %v3625_v0  ;;  %v934_v0 = vld [vmem:[#allocation6 + $0x630] sm:$0xff] }
 0x29c   :  { %2519 = vmatmul.mubr.bf16.vlgmr.msra.gmra.mrb[8].mxu1 %v4380_v26  ;;  %v3687_v5 = vcombine.high %v930_v63, %v934_v0 }
 0x29d   :  { %2605 = vmatmul.mubr.bf16.vlgmr.msra.gmra.mrb[12].mxu0 %v4380_v26  ;;  %2530 = vmatpush1.bf16.msra.mxu1 %v3622_v3  ;;  %v3640_v26 = vcombine.low %v883_v33, %v887_v11  ;;  %v3678_v3 = vcombine.low %v922_v46, %v926_v47  ;;  %v3686_v33 = vcombine.low %v930_v63, %v934_v0  ;;  %v979_v46 = vld [vmem:[#allocation6 + $0x798] sm:$0xff] }
 0x29e   :  { %2561 = vmatprep.mubr.bf16.mxu1 %v4386_v34  ;;  %2616 = vmatpush1.bf16.msra.mxu0 %v3624_v6  ;;  %v3689_v6 = vcombine.high %v931_v1, %v935_v2  ;;  %v3688_v11 = vcombine.low %v931_v1, %v935_v2  ;;  %v983_v47 = vld [vmem:[#allocation6 + $0x7b8] sm:$0xff] }
 0x29f   :  { %2647 = vmatprep.mubr.bf16.mxu0 %v4386_v34  ;;  %2531 = vmatprep.subr.bf16.mxu1 %v3631_v7  ;;  %v3646_v34 = vcombine.low %v890_v16, %v894_v17  ;;  %v938_v7 = vld [vmem:[#allocation6 + $0x650] sm:$0xff]  ;;  %v947_v16 = vld [vmem:[#allocation6 + $0x698] sm:$0xff]  ;;  %v3736_v2 = vcombine.low %v979_v46, %v983_v47 }
 0x2a0   :  { %2617 = vmatprep.subr.bf16.mxu0 %v3633_v10  ;;  %v943_v10 = vld [vmem:[#allocation6 + $0x678] sm:$0xff]  ;;  %v3694_v18 = vcombine.low %v938_v7, %v942_v8 }
 0x2a1   :  { %2532 = vmatpush1.bf16.msra.mxu1 %v3630_v12  ;;  %v3695_v12 = vcombine.high %v938_v7, %v942_v8  ;;  %v951_v17 = vld [vmem:[#allocation6 + $0x6b8] sm:$0xff]  ;;  %v3696_v21 = vcombine.low %v939_v9, %v943_v10  ;;  %v4062_v7 = vld [vmem:[#allocation7 + $0x40] sm:$0xff]  }
 0x2a2   :  { %2618 = vmatpush1.bf16.msra.mxu0 %v3632_v13  ;;  %2533 = vmatprep.subr.bf16.mxu1 %v3639_v14  ;;  %v3697_v13 = vcombine.high %v939_v9, %v943_v10  ;;  %v946_v14 = vld [vmem:[#allocation6 + $0x690] sm:$0xff]  ;;  %v3704_v31 = vcombine.low %v947_v16, %v951_v17  ;;  %v987_v63 = vld [vmem:[#allocation6 + $0x7d8] sm:$0xff]  ;;  %v4063_v8 = vld [vmem:[#allocation7 + $0xc0] sm:$0xff]  }
 0x2a3   :  { %2619 = vmatprep.subr.bf16.mxu0 %v3641_v15  ;;  %v950_v15 = vld [vmem:[#allocation6 + $0x6b0] sm:$0xff]  ;;  %v991_v0 = vld [vmem:[#allocation6 + $0x7f8] sm:$0xff]  ;;  %v4064_v9 = vld [vmem:[#allocation7] sm:$0xff]  }
 0x2a4   :  { %v3702_v30 = vcombine.low %v946_v14, %v950_v15  ;;  %v4065_v10 = vld [vmem:[#allocation7 + $0x80] sm:$0xff]  }
 0x2a5   :  { %2534 = vmatpush1.bf16.msra.mxu1 %v3638_v23  ;;  %v3703_v23 = vcombine.high %v946_v14, %v950_v15  ;;  %v4070_v14 = vld [vmem:[#allocation7 + $0x50] sm:$0xff]  }
 0x2a6   :  { %2620 = vmatpush1.bf16.msra.mxu0 %v3640_v26  ;;  %2535 = vmatprep.subr.bf16.mxu1 %v3647_v24  ;;  %v3705_v26 = vcombine.high %v947_v16, %v951_v17  ;;  %v954_v24 = vld [vmem:[#allocation6 + $0x6d0] sm:$0xff] }
 0x2a7   :  { %2621 = vmatprep.subr.bf16.mxu0 %v3649_v25  ;;  %v958_v25 = vld [vmem:[#allocation6 + $0x6f0] sm:$0xff] }
 0x2a8   :  { %v3710_v39 = vcombine.low %v954_v24, %v958_v25  ;;  %v4071_v15 = vld [vmem:[#allocation7 + $0xd0] sm:$0xff]  }
 0x2a9   :  { %2536 = vmatpush1.bf16.msra.mxu1 %v3646_v34  ;;  %v3711_v34 = vcombine.high %v954_v24, %v958_v25  ;;  %v4072_v16 = vld [vmem:[#allocation7 + $0x10] sm:$0xff]   ;;  %v4079_v24 = vld [vmem:[#allocation7 + $0xe0] sm:$0xff]  }
 0x2aa   :  { %2622 = vmatpush1.bf16.msra.mxu0 %v3648_v32  ;;  %2537 = vmatprep.subr.bf16.mxu1 %v3655_v35  ;;  %v3713_v32 = vcombine.high %v955_v28, %v959_v29  ;;  %v962_v35 = vld [vmem:[#allocation6 + $0x710] sm:$0xff]  ;;  %v4080_v25 = vld [vmem:[#allocation7 + $0x20] sm:$0xff]   ;;  %v4082_v29 = vld [vmem:[#allocation7 + $0x68] sm:$0xff]  }
 0x2ab   :  { %2623 = vmatprep.subr.bf16.mxu0 %v3657_v36  ;;  %v966_v36 = vld [vmem:[#allocation6 + $0x730] sm:$0xff]  ;;  %v4081_v28 = vld [vmem:[#allocation7 + $0xa0] sm:$0xff]  }
 0x2ac   :  { %v3718_v55 = vcombine.low %v962_v35, %v966_v36  ;;  %v4073_v17 = vld [vmem:[#allocation7 + $0x90] sm:$0xff]  }
 0x2ad   :  { %2538 = vmatpush1.bf16.msra.mxu1 %v3654_v44  ;;  %v3719_v44 = vcombine.high %v962_v35, %v966_v36  ;;  %v4087_v35 = vld [vmem:[#allocation7 + $0xf0] sm:$0xff]  }
 0x2ae   :  { %2624 = vmatpush1.bf16.msra.mxu0 %v3656_v48  ;;  %2539 = vmatprep.subr.bf16.mxu1 %v3663_v50  ;;  %v3721_v48 = vcombine.high %v963_v37, %v967_v38  ;;  %v970_v50 = vld [vmem:[#allocation6 + $0x750] sm:$0xff]  ;;  %v4090_v38 = vld [vmem:[#allocation7 + $0x78] sm:$0xff]  }
 0x2af   :  { %2625 = vmatprep.subr.bf16.mxu0 %v3665_v52  ;;  %v974_v52 = vld [vmem:[#allocation6 + $0x770] sm:$0xff] }
 0x2b0   :  { %v3726_v57 = vcombine.low %v970_v50, %v974_v52  ;;  %v4088_v36 = vld [vmem:[#allocation7 + $0x30] sm:$0xff]  }
 0x2b1   :  { %2540 = vmatpush1.bf16.msra.mxu1 %v3662_v41  ;;  %v3727_v41 = vcombine.high %v970_v50, %v974_v52  ;;  %v4089_v37 = vld [vmem:[#allocation7 + $0xb0] sm:$0xff]   ;;  %v4095_v50 = vld [vmem:[#allocation7 + $0x1c0] sm:$0xff]  }
 0x2b2   :  { %2626 = vmatpush1.bf16.msra.mxu0 %v3664_v42  ;;  %2541 = vmatprep.subr.bf16.mxu1 %v3671_v43  ;;  %v3729_v42 = vcombine.high %v971_v53, %v975_v54  ;;  %v978_v43 = vld [vmem:[#allocation6 + $0x790] sm:$0xff]  ;;  %v4413_v52 = vld [vmem:[%s4450_s6] sm:$0xff] }
 0x2b3   :  { %2627 = vmatprep.subr.bf16.mxu0 %v3673_v45  ;;  %v982_v45 = vld [vmem:[#allocation6 + $0x7b0] sm:$0xff]  ;;  %v997_v53 = vrot.slane %v4413_v52, %v4341_v20  ;;  %v1005_v54 = vrot.slane %v4413_v52, %v292_v49 }
 0x2b4   :  { %v3734_v1 = vcombine.low %v978_v43, %v982_v45 }
 0x2b5   :  { %2542 = vmatpush1.bf16.msra.mxu1 %v3670_v59  ;;  %v3735_v59 = vcombine.high %v978_v43, %v982_v45 }
 0x2b6   :  { %2628 = vmatpush1.bf16.msra.mxu0 %v3672_v60  ;;  %2543 = vmatprep.subr.bf16.mxu1 %v3679_v61  ;;  %v3737_v60 = vcombine.high %v979_v46, %v983_v47  ;;  %v986_v61 = vld [vmem:[#allocation6 + $0x7d0] sm:$0xff] }
 0x2b7   :  { %2629 = vmatprep.subr.bf16.mxu0 %v3681_v62  ;;  %v990_v62 = vld [vmem:[#allocation6 + $0x7f0] sm:$0xff] }
 0x2b9   :  { %2544 = vmatpush1.bf16.msra.mxu1 %v3678_v3  ;;  %v3743_v3 = vcombine.high %v986_v61, %v990_v62 }
 0x2ba   :  { %2630 = vmatpush1.bf16.msra.mxu0 %v3680_v4  ;;  %2545 = vmatprep.subr.bf16.mxu1 %v3687_v5  ;;  %v3745_v4 = vcombine.high %v987_v63, %v991_v0  ;;  %v3742_v5 = vcombine.low %v986_v61, %v990_v62 }
 0x2bb   :  { %2631 = vmatprep.subr.bf16.mxu0 %v3689_v6  ;;  %v3744_v6 = vcombine.low %v987_v63, %v991_v0 }
 0x2bd   :  { %2546 = vmatpush1.bf16.msra.mxu1 %v3686_v33  ;;  %v4066_v33 = vld [vmem:[#allocation7 + $0x48] sm:$0xff]  }
 0x2be   :  { %2632 = vmatpush1.bf16.msra.mxu0 %v3688_v11  ;;  %2547 = vmatprep.subr.bf16.mxu1 %v3695_v12  ;;  %v4067_v11 = vld [vmem:[#allocation7 + $0xc8] sm:$0xff]  }
 0x2bf   :  { %2633 = vmatprep.subr.bf16.mxu0 %v3697_v13  ;;  %v4068_v12 = vld [vmem:[#allocation7 + $0x8] sm:$0xff]  }
 0x2c0   :  { %v4069_v13 = vld [vmem:[#allocation7 + $0x88] sm:$0xff]  }
 0x2c1   :  { %2548 = vmatpush1.bf16.msra.mxu1 %v3694_v18  ;;  %v4074_v18 = vld [vmem:[#allocation7 + $0x58] sm:$0xff]  }
 0x2c2   :  { %2634 = vmatpush1.bf16.msra.mxu0 %v3696_v21  ;;  %2549 = vmatprep.subr.bf16.mxu1 %v3703_v23  ;;  %v4075_v21 = vld [vmem:[#allocation7 + $0xd8] sm:$0xff]  }
 0x2c3   :  { %2635 = vmatprep.subr.bf16.mxu0 %v3705_v26  ;;  %v4076_v23 = vld [vmem:[#allocation7 + $0x18] sm:$0xff]   ;;  %v4078_v26 = vld [vmem:[#allocation7 + $0x60] sm:$0xff]  }
 0x2c5   :  { %2550 = vmatpush1.bf16.msra.mxu1 %v3702_v30  ;;  %v4083_v30 = vld [vmem:[#allocation7 + $0xe8] sm:$0xff]  }
 0x2c6   :  { %2636 = vmatpush1.bf16.msra.mxu0 %v3704_v31  ;;  %2551 = vmatprep.subr.bf16.mxu1 %v3711_v34  ;;  %v4084_v31 = vld [vmem:[#allocation7 + $0x28] sm:$0xff]  }
 0x2c7   :  { %2637 = vmatprep.subr.bf16.mxu0 %v3713_v32  ;;  %v4085_v34 = vld [vmem:[#allocation7 + $0xa8] sm:$0xff]   ;;  %v4086_v32 = vld [vmem:[#allocation7 + $0x70] sm:$0xff]  }
 0x2c9   :  { %2552 = vmatpush1.bf16.msra.mxu1 %v3710_v39  ;;  %v4091_v39 = vld [vmem:[#allocation7 + $0xf8] sm:$0xff]  }
 0x2ca   :  { %2638 = vmatpush1.bf16.msra.mxu0 %v3712_v40  ;;  %2553 = vmatprep.subr.bf16.mxu1 %v3719_v44  ;;  %v4092_v40 = vld [vmem:[#allocation7 + $0x38] sm:$0xff]  }
 0x2cb   :  { %2639 = vmatprep.subr.bf16.mxu0 %v3721_v48  ;;  %v4093_v44 = vld [vmem:[#allocation7 + $0xb8] sm:$0xff]   ;;  %v4094_v48 = vld [vmem:[#allocation7 + $0x140] sm:$0xff]  }
 0x2cd   :  { %2554 = vmatpush1.bf16.msra.mxu1 %v3718_v55  ;;  %v1001_v55 = vrot.slane %v4413_v52, %v4347_v22 }
 0x2ce   :  { %2640 = vmatpush1.bf16.msra.mxu0 %v3720_v56  ;;  %2555 = vmatprep.subr.bf16.mxu1 %v3727_v41  ;;  %v1009_v56 = vrot.slane %v4413_v52, %v296_v51 }
 0x2cf   :  { %2641 = vmatprep.subr.bf16.mxu0 %v3729_v42 }
 0x2d1   :  { %2556 = vmatpush1.bf16.msra.mxu1 %v3726_v57 }
 0x2d2   :  { %2642 = vmatpush1.bf16.msra.mxu0 %v3728_v58  ;;  %2557 = vmatprep.subr.bf16.mxu1 %v3735_v59 }
 0x2d3   :  { %2643 = vmatprep.subr.bf16.mxu0 %v3737_v60 }
 0x2d5   :  { %2558 = vmatpush1.bf16.msra.mxu1 %v3734_v1 }
 0x2d6   :  { %2644 = vmatpush1.bf16.msra.mxu0 %v3736_v2  ;;  %2559 = vmatprep.subr.bf16.mxu1 %v3743_v3 }
 0x2d7   :  { %2645 = vmatprep.subr.bf16.mxu0 %v3745_v4 }
 0x2d9   :  { %2560 = vmatpush1.bf16.msra.mxu1 %v3742_v5 }
 0x2da   :  { %2646 = vmatpush1.bf16.msra.mxu0 %v3744_v6  ;;  %3820 = vmatprep.subr.bf16.mxu1 %v4062_v7 }
 0x2db   :  { %3842 = vmatprep.subr.bf16.mxu0 %v4063_v8 }
 0x2dc   :  { %2562 = vmatmul.mubr.bf16.vlgmr.msra.gmra.mrb[8].mxu1 %v4382_v27 }
 0x2dd   :  { %2648 = vmatmul.mubr.bf16.vlgmr.msra.gmra.mrb[12].mxu0 %v4382_v27  ;;  %3821 = vmatpush3.bf16.msra.mxu1 %v4064_v9  ;;  %v4077_v27 = vld [vmem:[#allocation7 + $0x98] sm:$0xff]  }
 0x2de   :  { %3843 = vmatpush3.bf16.msra.mxu0 %v4065_v10  ;;  %3822 = vmatprep.subr.bf16.mxu1 %v4066_v33 }
 0x2df   :  { %3844 = vmatprep.subr.bf16.mxu0 %v4067_v11 }
 0x2e1   :  { %3823 = vmatpush3.bf16.msra.mxu1 %v4068_v12 }
 0x2e2   :  { %3845 = vmatpush3.bf16.msra.mxu0 %v4069_v13  ;;  %3824 = vmatprep.subr.bf16.mxu1 %v4070_v14 }
 0x2e3   :  { %3846 = vmatprep.subr.bf16.mxu0 %v4071_v15 }
 0x2e5   :  { %3825 = vmatpush3.bf16.msra.mxu1 %v4072_v16 }
 0x2e6   :  { %3847 = vmatpush3.bf16.msra.mxu0 %v4073_v17  ;;  %3826 = vmatprep.subr.bf16.mxu1 %v4074_v18  ;;  %v4096_v18 = vld [vmem:[#allocation7 + $0x100] sm:$0xff]  }
 0x2e7   :  { %3848 = vmatprep.subr.bf16.mxu0 %v4075_v21  ;;  %v4097_v21 = vld [vmem:[#allocation7 + $0x180] sm:$0xff]  }
 0x2e9   :  { %3827 = vmatpush3.bf16.msra.mxu1 %v4076_v23  ;;  %v4098_v23 = vld [vmem:[#allocation7 + $0x148] sm:$0xff]  }
 0x2ea   :  { %3849 = vmatpush3.bf16.msra.mxu0 %v4077_v27  ;;  %3828 = vmatprep.subr.bf16.mxu1 %v4078_v26  ;;  %v4099_v27 = vld [vmem:[#allocation7 + $0x1c8] sm:$0xff]  }
 0x2eb   :  { %3850 = vmatprep.subr.bf16.mxu0 %v4079_v24  ;;  %v4100_v26 = vld [vmem:[#allocation7 + $0x108] sm:$0xff]  }
 0x2ec   :  { %v4101_v24 = vld [vmem:[#allocation7 + $0x188] sm:$0xff]  }
 0x2ed   :  { %3829 = vmatpush3.bf16.msra.mxu1 %v4080_v25  ;;  %v4102_v25 = vld [vmem:[#allocation7 + $0x150] sm:$0xff]  }
 0x2ee   :  { %3851 = vmatpush3.bf16.msra.mxu0 %v4081_v28  ;;  %3830 = vmatprep.subr.bf16.mxu1 %v4082_v29  ;;  %v4103_v28 = vld [vmem:[#allocation7 + $0x1d0] sm:$0xff]  }
 0x2ef   :  { %3852 = vmatprep.subr.bf16.mxu0 %v4083_v30  ;;  %v4104_v29 = vld [vmem:[#allocation7 + $0x110] sm:$0xff]  }
 0x2f0   :  { %v4105_v30 = vld [vmem:[#allocation7 + $0x190] sm:$0xff]  }
 0x2f1   :  { %3831 = vmatpush3.bf16.msra.mxu1 %v4084_v31  ;;  %v4106_v31 = vld [vmem:[#allocation7 + $0x158] sm:$0xff]  }
 0x2f2   :  { %3853 = vmatpush3.bf16.msra.mxu0 %v4085_v34  ;;  %3832 = vmatprep.subr.bf16.mxu1 %v4086_v32  ;;  %v4107_v34 = vld [vmem:[#allocation7 + $0x1d8] sm:$0xff]  }
 0x2f3   :  { %3854 = vmatprep.subr.bf16.mxu0 %v4087_v35  ;;  %v4108_v32 = vld [vmem:[#allocation7 + $0x118] sm:$0xff]  }
 0x2f4   :  { %v4109_v35 = vld [vmem:[#allocation7 + $0x198] sm:$0xff]  }
 0x2f5   :  { %3833 = vmatpush3.bf16.msra.mxu1 %v4088_v36  ;;  %v4110_v36 = vld [vmem:[#allocation7 + $0x160] sm:$0xff]  }
 0x2f6   :  { %3855 = vmatpush3.bf16.msra.mxu0 %v4089_v37  ;;  %3834 = vmatprep.subr.bf16.mxu1 %v4090_v38  ;;  %v4111_v37 = vld [vmem:[#allocation7 + $0x1e0] sm:$0xff]  }
 0x2f7   :  { %3856 = vmatprep.subr.bf16.mxu0 %v4091_v39  ;;  %v4112_v38 = vld [vmem:[#allocation7 + $0x120] sm:$0xff]  }
 0x2f8   :  { %v4113_v39 = vld [vmem:[#allocation7 + $0x1a0] sm:$0xff]  }
 0x2f9   :  { %3835 = vmatpush3.bf16.msra.mxu1 %v4092_v40  ;;  %v4114_v40 = vld [vmem:[#allocation7 + $0x168] sm:$0xff]  }
 0x2fa   :  { %3857 = vmatpush3.bf16.msra.mxu0 %v4093_v44  ;;  %3864 = vmatprep.subr.bf16.mxu1 %v4094_v48  ;;  %v4115_v44 = vld [vmem:[#allocation7 + $0x1e8] sm:$0xff]  }
 0x2fb   :  { %3886 = vmatprep.subr.bf16.mxu0 %v4095_v50  ;;  %v4116_v48 = vld [vmem:[#allocation7 + $0x128] sm:$0xff]  }
 0x2fc   :  { %v4117_v50 = vld [vmem:[#allocation7 + $0x1a8] sm:$0xff]  }
 0x32f   :  { %v2391_v41 = vpop.f32.mrb[4].mxu1  ;;  %v2477_v42 = vpop.f32.mrb[8].mxu0 }
 0x330   :  { %v3908_v43 = vadd.f32 %v2391_v41, %v997_v53  ;;  %v3912_v45 = vadd.f32 %v2477_v42, %v1005_v54  ;;  %v2393_v46 = vpop.f32.mrb[5].mxu1  ;;  %v2479_v47 = vpop.f32.mrb[9].mxu0  ;;  %v4122_v41 = vld [vmem:[#allocation7 + $0x178] sm:$0xff]  }
 0x331   :  { %v3909_v57 = vadd.f32 %v2393_v46, %v1001_v55  ;;  %v3913_v58 = vadd.f32 %v2479_v47, %v1009_v56  ;;  %v2395_v20 = vpop.f32.mrb[6].mxu1  ;;  %v2481_v59 = vpop.f32.mrb[10].mxu0  ;;  %v4123_v42 = vld [vmem:[#allocation7 + $0x1f8] sm:$0xff]   ;;  %v1012_v46 = vsub.s32 4, %v4338_v19  ;;  %v1020_v47 = vsub.s32 6, %v4338_v19 }
 0x332   :  { %vm2658_vm13 = vcmp.gt.f32.partialorder %v3908_v43, 0.0  ;;  %v2674_v60 = vmul.f32 0.2, %v3908_v43  ;;  %vm2660_vm14 = vcmp.gt.f32.partialorder %v3912_v45, 0.0  ;;  %v2676_v49 = vmul.f32 0.2, %v3912_v45 }
 0x333   :  { %vm2659_vm15 = vcmp.gt.f32.partialorder %v3909_v57, 0.0  ;;  %v2675_v22 = vmul.f32 0.2, %v3909_v57  ;;  %vm2661_vm0 = vcmp.gt.f32.partialorder %v3913_v58, 0.0  ;;  %v2677_v61 = vmul.f32 0.2, %v3913_v58 }
 0x334   :  { %v3910_v62 = vadd.f32 %v2395_v20, %v997_v53  ;;  %v3914_v51 = vadd.f32 %v2481_v59, %v1005_v54  ;;  %v2397_v63 = vpop.f32.mrb[7].mxu1  ;;  %v2483_v0 = vpop.f32.mrb[11].mxu0  ;;  %v2690_v1 = vsel %vm2658_vm13, %v3908_v43, %v2674_v60  ;;  %v2692_v2 = vsel %vm2660_vm14, %v3912_v45, %v2676_v49  ;;  %v4118_v53 = vld [vmem:[#allocation7 + $0x170] sm:$0xff]   ;;  %v4124_v43 = vld [vmem:[#allocation7 + $0x138] sm:$0xff]  }
 0x335   :  { %v3911_v3 = vadd.f32 %v2397_v63, %v1001_v55  ;;  %v3915_v4 = vadd.f32 %v2483_v0, %v1009_v56  ;;  %v2691_v33 = vsel %vm2659_vm15, %v3909_v57, %v2675_v22  ;;  %v2693_v11 = vsel %vm2661_vm0, %v3913_v58, %v2677_v61  ;;  %v4119_v54 = vld [vmem:[#allocation7 + $0x1f0] sm:$0xff]   ;;  %v4125_v45 = vld [vmem:[#allocation7 + $0x1b8] sm:$0xff]  }
 0x336   :  { %vm2666_vm1 = vcmp.gt.f32.partialorder %v3910_v62, 0.0  ;;  %v2682_v5 = vmul.f32 0.2, %v3910_v62  ;;  %vm2668_vm2 = vcmp.gt.f32.partialorder %v3914_v51, 0.0  ;;  %v2684_v6 = vmul.f32 0.2, %v3914_v51 }
 0x337   :  { %vm2667_vm3 = vcmp.gt.f32.partialorder %v3911_v3, 0.0  ;;  %v2683_v7 = vmul.f32 0.2, %v3911_v3  ;;  %vm2669_vm4 = vcmp.gt.f32.partialorder %v3915_v4, 0.0  ;;  %v2685_v8 = vmul.f32 0.2, %v3915_v4 }
 0x338   :  { %v2698_v9 = vsel %vm2666_vm1, %v3910_v62, %v2682_v5  ;;  %v2700_v10 = vsel %vm2668_vm2, %v3914_v51, %v2684_v6  ;;  %v4120_v55 = vld [vmem:[#allocation7 + $0x130] sm:$0xff]   ;;  %v1016_v57 = vsub.s32 5, %v4338_v19  ;;  %v1024_v58 = vsub.s32 7, %v4338_v19 }
 0x339   :  { %v2706_v12 = vpack.c.bf16 %v2698_v9, %v2690_v1  ;;  %v2708_v13 = vpack.c.bf16 %v2700_v10, %v2692_v2  ;;  %v2699_v14 = vsel %vm2667_vm3, %v3911_v3, %v2683_v7  ;;  %v2701_v15 = vsel %vm2669_vm4, %v3915_v4, %v2685_v8  ;;  %v4121_v56 = vld [vmem:[#allocation7 + $0x1b0] sm:$0xff]  }
 0x33a   :  { %v2707_v16 = vpack.c.bf16 %v2699_v14, %v2691_v33  ;;  %v2709_v17 = vpack.c.bf16 %v2701_v15, %v2693_v11  ;;  %v1013_v20 = vrot.slane %v4413_v52, %v1012_v46  ;;  %v1021_v59 = vrot.slane %v4413_v52, %v1020_v47 }
 0x33b   :  { %v1017_v60 = vrot.slane %v4413_v52, %v1016_v57  ;;  %v1025_v49 = vrot.slane %v4413_v52, %v1024_v58 }
 0x33c   :  { %3265 = vmatprep.mubr.bf16.mxu1 %v2707_v16  ;;  %3306 = vmatprep.mubr.bf16.mxu0 %v2709_v17 }
 0x33d   :  { %3266 = vmatmul.mubr.bf16.vlgmr.msra.gmra.mrb[12].mxu1 %v2706_v12  ;;  %3307 = vmatmul.mubr.bf16.vlgmr.msra.gmra.mrb[16].mxu0 %v2708_v13 }
 0x33e   :  { %3865 = vmatpush3.bf16.msra.mxu1 %v4096_v18  ;;  %3887 = vmatpush3.bf16.msra.mxu0 %v4097_v21 }
 0x33f   :  { %3866 = vmatprep.subr.bf16.mxu1 %v4098_v23  ;;  %3888 = vmatprep.subr.bf16.mxu0 %v4099_v27 }
 0x342   :  { %3867 = vmatpush3.bf16.msra.mxu1 %v4100_v26  ;;  %3889 = vmatpush3.bf16.msra.mxu0 %v4101_v24 }
 0x343   :  { %3868 = vmatprep.subr.bf16.mxu1 %v4102_v25  ;;  %3890 = vmatprep.subr.bf16.mxu0 %v4103_v28 }
 0x346   :  { %3869 = vmatpush3.bf16.msra.mxu1 %v4104_v29  ;;  %3891 = vmatpush3.bf16.msra.mxu0 %v4105_v30 }
 0x347   :  { %3870 = vmatprep.subr.bf16.mxu1 %v4106_v31  ;;  %3892 = vmatprep.subr.bf16.mxu0 %v4107_v34 }
 0x34a   :  { %3871 = vmatpush3.bf16.msra.mxu1 %v4108_v32  ;;  %3893 = vmatpush3.bf16.msra.mxu0 %v4109_v35  ;;  %v3746_v32 = vld [vmem:[%s4452_s8] ss:$0 sm:$0xff] }
 0x34b   :  { %3872 = vmatprep.subr.bf16.mxu1 %v4110_v36  ;;  %3894 = vmatprep.subr.bf16.mxu0 %v4111_v37 }
 0x34e   :  { %3873 = vmatpush3.bf16.msra.mxu1 %v4112_v38  ;;  %3895 = vmatpush3.bf16.msra.mxu0 %v4113_v39 }
 0x34f   :  { %3874 = vmatprep.subr.bf16.mxu1 %v4114_v40  ;;  %3896 = vmatprep.subr.bf16.mxu0 %v4115_v44 }
 0x352   :  { %3875 = vmatpush3.bf16.msra.mxu1 %v4116_v48  ;;  %3897 = vmatpush3.bf16.msra.mxu0 %v4117_v50 }
 0x353   :  { %3876 = vmatprep.subr.bf16.mxu1 %v4118_v53  ;;  %3898 = vmatprep.subr.bf16.mxu0 %v4119_v54 }
 0x356   :  { %3877 = vmatpush3.bf16.msra.mxu1 %v4120_v55  ;;  %3899 = vmatpush3.bf16.msra.mxu0 %v4121_v56 }
 0x357   :  { %3878 = vmatprep.subr.bf16.mxu1 %v4122_v41  ;;  %3900 = vmatprep.subr.bf16.mxu0 %v4123_v42 }
 0x35a   :  { %3879 = vmatpush3.bf16.msra.mxu1 %v4124_v43  ;;  %3901 = vmatpush3.bf16.msra.mxu0 %v4125_v45 }
 0x3af   :  { %v2563_v22 = vpop.f32.mrb[8].mxu1 }
 0x3b0   :  { %v3916_v61 = vadd.f32 %v2563_v22, %v1013_v20  ;;  %v2649_v62 = vpop.f32.mrb[12].mxu0  ;;  %v2565_v51 = vpop.f32.mrb[9].mxu1 }
 0x3b1   :  { %v3920_v63 = vadd.f32 %v2649_v62, %v1021_v59  ;;  %v3917_v0 = vadd.f32 %v2565_v51, %v1017_v60  ;;  %v2651_v1 = vpop.f32.mrb[13].mxu0  ;;  %v2567_v2 = vpop.f32.mrb[10].mxu1 }
 0x3b2   :  { %v2678_v3 = vmul.f32 0.2, %v3916_v61  ;;  %v3921_v4 = vadd.f32 %v2651_v1, %v1025_v49  ;;  %v3918_v5 = vadd.f32 %v2567_v2, %v1013_v20  ;;  %v2653_v19 = vpop.f32.mrb[14].mxu0  ;;  %v2569_v6 = vpop.f32.mrb[11].mxu1  ;;  %vm2662_vm5 = vcmp.gt.f32.partialorder %v3916_v61, 0.0 }
 0x3b3   :  { %vm2664_vm6 = vcmp.gt.f32.partialorder %v3920_v63, 0.0  ;;  %v2680_v7 = vmul.f32 0.2, %v3920_v63  ;;  %vm2663_vm7 = vcmp.gt.f32.partialorder %v3917_v0, 0.0  ;;  %v2655_v8 = vpop.f32.mrb[15].mxu0  ;;  %v3922_v10 = vadd.f32 %v2653_v19, %v1021_v59 }
 0x3b4   :  { %vm2670_vm8 = vcmp.gt.f32.partialorder %v3918_v5, 0.0  ;;  %v2679_v52 = vmul.f32 0.2, %v3917_v0  ;;  %v2686_v9 = vmul.f32 0.2, %v3918_v5  ;;  %v3919_v33 = vadd.f32 %v2569_v6, %v1017_v60 }
 0x3b5   :  { %v2694_v11 = vsel %vm2662_vm5, %v3916_v61, %v2678_v3  ;;  %vm2665_vm9 = vcmp.gt.f32.partialorder %v3921_v4, 0.0  ;;  %v2681_v12 = vmul.f32 0.2, %v3921_v4  ;;  %v3923_v13 = vadd.f32 %v2655_v8, %v1025_v49 }
 0x3b6   :  { %v2702_v14 = vsel %vm2670_vm8, %v3918_v5, %v2686_v9  ;;  %vm2672_vm10 = vcmp.gt.f32.partialorder %v3922_v10, 0.0  ;;  %v2688_v15 = vmul.f32 0.2, %v3922_v10  ;;  %vm2671_vm11 = vcmp.gt.f32.partialorder %v3919_v33, 0.0 }
 0x3b7   :  { %v2710_v16 = vpack.c.bf16 %v2702_v14, %v2694_v11  ;;  %v2687_v17 = vmul.f32 0.2, %v3919_v33  ;;  %vm2673_vm12 = vcmp.gt.f32.partialorder %v3923_v13, 0.0  ;;  %v2689_v18 = vmul.f32 0.2, %v3923_v13 }
 0x3b8   :  { %v2696_v21 = vsel %vm2664_vm6, %v3920_v63, %v2680_v7  ;;  %v2704_v23 = vsel %vm2672_vm10, %v3922_v10, %v2688_v15  ;;  %v2695_v27 = vsel %vm2663_vm7, %v3917_v0, %v2679_v52  ;;  %v2697_v25 = vsel %vm2665_vm9, %v3921_v4, %v2681_v12 }
 0x3b9   :  { %v2712_v26 = vpack.c.bf16 %v2704_v23, %v2696_v21  ;;  %v2703_v24 = vsel %vm2671_vm11, %v3919_v33, %v2687_v17  ;;  %v2705_v28 = vsel %vm2673_vm12, %v3923_v13, %v2689_v18 }
 0x3ba   :  { %v2711_v29 = vpack.c.bf16 %v2703_v24, %v2695_v27  ;;  %v2713_v30 = vpack.c.bf16 %v2705_v28, %v2697_v25 }
 0x3bc   :  { %3347 = vmatprep.mubr.bf16.mxu1 %v2711_v29  ;;  %3388 = vmatprep.mubr.bf16.mxu0 %v2713_v30 }
 0x3bd   :  { %3348 = vmatmul.mubr.bf16.vlgmr.msra.gmra.mrb[16].mxu1 %v2710_v16  ;;  %3389 = vmatmul.mubr.bf16.vlgmr.msra.gmra.mrb[20].mxu0 %v2712_v26 }
 0x410   :  { %v3836_v31 = vpop.f32.mrb[12].mxu1  ;;  %v3858_v34 = vpop.f32.mrb[16].mxu0 }
 0x411   :  { %v3837_v35 = vpop.f32.mrb[13].mxu1  ;;  %v3859_v36 = vpop.f32.mrb[17].mxu0 }
 0x412   :  { %v3838_v37 = vadd.f32 %v3837_v35, %v3836_v31  ;;  %v3860_v38 = vadd.f32 %v3859_v36, %v3858_v34  ;;  %v3839_v39 = vpop.f32.mrb[14].mxu1  ;;  %v3861_v40 = vpop.f32.mrb[18].mxu0 }
 0x413   :  { %v3840_v44 = vpop.f32.mrb[15].mxu1  ;;  %v3862_v48 = vpop.f32.mrb[19].mxu0 }
 0x414   :  { %v3268_v50 = vadd.f32 %v3838_v37, %v3746_v32  ;;  %v3841_v53 = vadd.f32 %v3840_v44, %v3839_v39  ;;  %v3863_v54 = vadd.f32 %v3862_v48, %v3861_v40 }
 0x416   :  { %v3309_v55 = vadd.f32 %v3860_v38, %v3268_v50  ;;  %v3271_v56 = vadd.f32 %v3841_v53, %v3746_v32 }
 0x418   :  { %v3312_v41 = vadd.f32 %v3863_v54, %v3271_v56 }
 0x490   :  { %v3880_v42 = vpop.f32.mrb[16].mxu1  ;;  %v3902_v43 = vpop.f32.mrb[20].mxu0 }
 0x491   :  { %v3881_v45 = vpop.f32.mrb[17].mxu1  ;;  %v3903_v46 = vpop.f32.mrb[21].mxu0 }
 0x492   :  { %v3882_v47 = vadd.f32 %v3881_v45, %v3880_v42  ;;  %v3904_v57 = vadd.f32 %v3903_v46, %v3902_v43  ;;  %v3883_v58 = vpop.f32.mrb[18].mxu1  ;;  %v3905_v20 = vpop.f32.mrb[22].mxu0 }
 0x493   :  { %v3884_v59 = vpop.f32.mrb[19].mxu1  ;;  %v3906_v60 = vpop.f32.mrb[23].mxu0 }
 0x494   :  { %v3350_v49 = vadd.f32 %v3882_v47, %v3309_v55  ;;  %v3885_v22 = vadd.f32 %v3884_v59, %v3883_v58  ;;  %v3907_v61 = vadd.f32 %v3906_v60, %v3905_v20 }
 0x496   :  { %v3391_v62 = vadd.f32 %v3904_v57, %v3350_v49  ;;  %v3353_v51 = vadd.f32 %v3885_v22, %v3312_v41 }
 0x498   :  { %v3394_v63 = vadd.f32 %v3907_v61, %v3353_v51  ;;  %4126 = vtanh.f32 %v3391_v62 }
 0x49a   :  { %4128 = vtanh.f32 %v3394_v63 }
 0x4a2   :  { %v4127_v0 = vpop.eup %4126 }
 0x4a4   :  { %v4129_v1 = vpop.eup %4128 }
 0x4a5   :  { %v3818_v2 = vpack.c.bf16 %v4129_v1, %v4127_v0 }
 0x4a7   :  { %3819 = vst [vmem:[%s4453_s9] sm:$0xff] %v3818_v2  }
 0x4a8   :  { %3413 = vsyncpa [#allocation3], 1 }
 0x4a9   :  { %3414 = vsyncpa [#allocation5], 1 }
 0x4aa   :  { %3415 = vsyncpa [#allocation8], 1 }

</bundles_post_ra>
